<compile_context>
chip_gen: v7x
topology: tpu7x:2x2x1
jax: 0.10.0
libtpu: 0.0.40
codegen_flags: <defaults>
</compile_context>

<pallas_src>
import functools
import math

import jax
import jax.numpy as jnp
from jax.experimental import pallas as pl
from jax.experimental.pallas import tpu as pltpu


# ----------------------------------------------------------------------------
# in-kernel helpers (traced inside the Pallas kernel body)
# ----------------------------------------------------------------------------
def _conv1d_same_im2col(x_slab, w_flat, b_col, *, batch, window, ksize):
    """'same' 1-D conv on a (C_pad, B*T) slab via a single im2col matmul.

    x_slab: (C_pad, B*T)      channel rows zero-padded to a sublane multiple (8)
    w_flat: (C_pad, K*C_pad)  column order k*C_pad + ci  (== w[co, ci, k])
    b_col : (C_pad, 1)
    """
    cp = x_slab.shape[0]
    pad = (ksize - 1) // 2
    zeros = jnp.zeros((cp, pad), jnp.float32)
    cols = []
    for b in range(batch):                                    # static unroll (B small)
        seg = x_slab[:, b * window:(b + 1) * window]           # (C_pad, T)
        xp = jnp.concatenate([zeros, seg, zeros], axis=1)      # (C_pad, T + 2*pad)
        # every piece is C_pad (multiple of 8) rows -> aligned sublane concat
        cols.append(jnp.concatenate(
            [xp[:, k:k + window] for k in range(ksize)], axis=0))   # (K*C_pad, T)
    patch = jnp.concatenate(cols, axis=1)                      # (K*C_pad, B*T)
    out = jnp.dot(w_flat, patch, preferred_element_type=jnp.float32)
    return out + b_col


def _layer_norm_time(x_slab, gamma_1t, beta_1t, *, batch, window, eps=1e-5):
    """LayerNorm over the time axis, per (batch segment, channel row)."""
    outs = []
    for b in range(batch):
        seg = x_slab[:, b * window:(b + 1) * window]           # (C_pad, T)
        mu = jnp.mean(seg, axis=-1, keepdims=True)
        var = jnp.mean((seg - mu) ** 2, axis=-1, keepdims=True)
        outs.append((seg - mu) * jax.lax.rsqrt(var + eps) * gamma_1t + beta_1t)
    return jnp.concatenate(outs, axis=1)                       # (C_pad, B*T)


def _elu(x):
    # clamp the argument so the discarded exp branch can never overflow to inf
    return jnp.where(x > 0.0, x, jnp.exp(jnp.minimum(x, 0.0)) - 1.0)


# ----------------------------------------------------------------------------
# the kernel: full encode -> inverseFFT -> decode -> squared error, whole batch
# in a single invocation (no grid).
# ----------------------------------------------------------------------------
def _phase_embedding_kernel(
    x_ref,                              # (C_pad, B*T)
    w1_ref, b1_ref, g1_ref, be1_ref,    # conv1 (im2col-flattened) + LayerNorm
    w2_ref, b2_ref,                     # conv2
    wfc0_ref, wfc1_ref, bfc_ref,        # per-channel Linear(window, 2), batch-tiled
    w3_ref, b3_ref, g2_ref, be2_ref,    # conv3 + LayerNorm
    w4_ref, b4_ref,                     # conv4
    dft_ref,                            # fused DFT matrix (T, 2F) = [cos | -sin]
    freqs_ref,                          # (1, F-1)
    args_ref,                           # (1, T)
    sqerr_ref,                          # (C_pad, B*T) squared-error map (output)
    *, batch, window, ksize, nfreq):
    bsz, t, f = batch, window, nfreq
    x = x_ref[...].astype(jnp.float32)                         # (C_pad, B*T)
    cp = x.shape[0]

    conv = functools.partial(_conv1d_same_im2col, batch=bsz, window=t, ksize=ksize)
    ln = functools.partial(_layer_norm_time, batch=bsz, window=t)

    # ----- encode: feature_extraction = Conv1d -> LayerNorm -> ELU -> Conv1d -----
    h = conv(x, w1_ref[...], b1_ref[...])
    h = _elu(ln(h, g1_ref[...], be1_ref[...]))
    feat = conv(h, w2_ref[...], b2_ref[...])                   # (C_pad, B*T)

    # ----- rFFT via a single fused DFT matmul, batch stacked on sublanes -----
    feat_s = jnp.concatenate(
        [feat[:, b * t:(b + 1) * t] for b in range(bsz)], axis=0)   # (B*C_pad, T)
    reim = jnp.dot(feat_s, dft_ref[...],
                   preferred_element_type=jnp.float32)              # (B*C_pad, 2F)
    re = reim[:, :f]                                            # (B*C_pad, F)
    im = reim[:, f:]                                            # (B*C_pad, F)
    power = re[:, 1:] ** 2 + im[:, 1:] ** 2                     # (B*C_pad, F-1)
    psum = jnp.sum(power, axis=-1, keepdims=True)               # (B*C_pad, 1)
    # eps guard keeps zero (padded / dead) channels finite instead of NaN
    freq = (jnp.sum(freqs_ref[...] * power, axis=-1, keepdims=True)
            / jnp.maximum(psum, 1e-12))
    amp = 2.0 * jnp.sqrt(psum) / t
    offset = re[:, 0:1] / t

    # ----- per-channel fc -> phase (atan2 / pi) -----
    v0 = jnp.sum(feat_s * wfc0_ref[...], axis=-1, keepdims=True) + bfc_ref[:, 0:1]
    v1 = jnp.sum(feat_s * wfc1_ref[...], axis=-1, keepdims=True) + bfc_ref[:, 1:2]
    p = jnp.arctan2(v1, v0) / jnp.pi                           # (B*C_pad, 1)

    # ----- inverse FFT: z = amp * sin(pi*(freq*args + p)) + offset -----
    z_s = amp * jnp.sin(jnp.pi * (freq * args_ref[...] + p)) + offset    # (B*C_pad, T)
    z = jnp.concatenate(
        [z_s[b * cp:(b + 1) * cp, :] for b in range(bsz)], axis=1)       # (C_pad, B*T)

    # ----- decode: reconstruct = Conv1d -> LayerNorm -> ELU -> Conv1d -----
    h2 = conv(z, w3_ref[...], b3_ref[...])
    h2 = _elu(ln(h2, g2_ref[...], be2_ref[...]))
    x_hat = conv(h2, w4_ref[...], b4_ref[...])                 # (C_pad, B*T)

    # ----- dense squared-error map; mean / normalization hoisted to wrapper -----
    diff = x_hat - x
    sqerr_ref[...] = diff * diff


# ----------------------------------------------------------------------------
# parameters / buffers (deterministic synthetic init, PyTorch-native shapes)
# ----------------------------------------------------------------------------
def make_params(key, in_channels, out_channels, kernel_size, window):
    mid = in_channels // 2
    ks = jax.random.split(key, 12)

    def uni(k, shape, fan_in):
        bound = 1.0 / math.sqrt(fan_in)
        return jax.random.uniform(k, shape, jnp.float32, minval=-bound, maxval=bound)

    return {
        # feature_extraction
        "w1": uni(ks[0], (mid, in_channels, kernel_size), in_channels * kernel_size),
        "b1": uni(ks[1], (mid, 1), in_channels * kernel_size),
        "g1": jnp.ones((1, window), jnp.float32),
        "be1": jnp.zeros((1, window), jnp.float32),
        "w2": uni(ks[2], (out_channels, mid, kernel_size), mid * kernel_size),
        "b2": uni(ks[3], (out_channels, 1), mid * kernel_size),
        # fc (one Linear(window, 2) per output channel), stored row-wise
        "wfc0": uni(ks[4], (out_channels, window), window),
        "wfc1": uni(ks[5], (out_channels, window), window),
        "bfc": uni(ks[6], (out_channels, 2), window),
        # reconstruct
        "w3": uni(ks[7], (mid, out_channels, kernel_size), out_channels * kernel_size),
        "b3": uni(ks[8], (mid, 1), out_channels * kernel_size),
        "g2": jnp.ones((1, window), jnp.float32),
        "be2": jnp.zeros((1, window), jnp.float32),
        "w4": uni(ks[9], (in_channels, mid, kernel_size), mid * kernel_size),
        "b4": uni(ks[10], (in_channels, 1), mid * kernel_size),
    }


def make_buffers(window, duration):
    f = window // 2 + 1
    t = jnp.arange(window, dtype=jnp.float32)
    fr = jnp.arange(f, dtype=jnp.float32)
    ang = 2.0 * jnp.pi * t[:, None] * fr[None, :] / window        # (T, F)
    # fused real/imag DFT matrix: rfft(x)[f] = x @ cos - i * (x @ sin)
    dft = jnp.concatenate([jnp.cos(ang), -jnp.sin(ang)], axis=1).astype(jnp.float32)  # (T, 2F)
    # torch.fft.rfftfreq(window)[1:] * window / duration == arange(1, F) / duration
    freqs = (jnp.arange(1, f, dtype=jnp.float32) / duration)[None, :]   # (1, F-1)
    args = jnp.linspace(-duration, duration, window, dtype=jnp.float32)[None, :]  # (1, T)
    return dft, freqs, args


# ----------------------------------------------------------------------------
# wrapper: glue + pallas_call
# ----------------------------------------------------------------------------
def form_input(data):
    """Mirror of PhaseEmbedding.form_input (plain-JAX glue)."""
    jpos, acc = data["jpos"], data["acc"]
    bs, tlen = acc.shape[0], acc.shape[1]
    head_pos = jpos[:, :, 15]                                     # (B, T, 3)
    head_pos = jnp.pad(head_pos, ((0, 0), (1, 0), (0, 0)))        # pad one step in front
    head_vel = head_pos[:, 1:] - head_pos[:, :-1]                 # (B, T, 3)
    return jnp.concatenate([acc.reshape(bs, tlen, -1),
                            head_vel.reshape(bs, tlen, -1)], axis=-1)   # (B, T, C_in)


def _round_up(n, m):
    return ((n + m - 1) // m) * m


def phase_embedding_forward(data, params, buffers):
    """Full forward: form_input -> encode -> decode -> mse_loss (scalar)."""
    x = form_input(data)                                          # (B, T, C_in)
    bsz, t, cin = x.shape
    ksize = params["w1"].shape[-1]
    mid, cout = params["w1"].shape[0], params["w2"].shape[0]
    cp = _round_up(max(cin, mid, cout), 8)        # one padded channel count for all stages
    nfreq = t // 2 + 1

    # pack batch on lanes: (C_in, B*T) with column b*T + t, zero-pad rows to cp
    x2d = jnp.transpose(x, (2, 0, 1)).reshape(cin, bsz * t).astype(jnp.float32)
    x_slab = jnp.zeros((cp, bsz * t), jnp.float32).at[:cin].set(x2d)

    def flat_w(w):
        # (C_out, C_in, K) -> (cp, K*cp), column order k*cp + ci, zero-padded
        co, ci, kk = w.shape
        wt = jnp.transpose(w, (0, 2, 1))                          # (co, kk, ci)
        wp = jnp.zeros((cp, kk, cp), jnp.float32).at[:co, :, :ci].set(wt)
        return wp.reshape(cp, kk * cp)

    def pad_rows(a):
        out = jnp.zeros((cp,) + a.shape[1:], jnp.float32)
        return out.at[:a.shape[0]].set(a)

    dft, freqs, args = buffers
    ops = [
        flat_w(params["w1"]), pad_rows(params["b1"]), params["g1"], params["be1"],
        flat_w(params["w2"]), pad_rows(params["b2"]),
        jnp.tile(pad_rows(params["wfc0"]), (bsz, 1)),             # (B*cp, T)
        jnp.tile(pad_rows(params["wfc1"]), (bsz, 1)),             # (B*cp, T)
        jnp.tile(pad_rows(params["bfc"]), (bsz, 1)),              # (B*cp, 2)
        flat_w(params["w3"]), pad_rows(params["b3"]), params["g2"], params["be2"],
        flat_w(params["w4"]), pad_rows(params["b4"]),
        dft, freqs, args,
    ]

    kernel = functools.partial(_phase_embedding_kernel,
                               batch=bsz, window=t, ksize=ksize, nfreq=nfreq)
    # single invocation (no grid): whole batch processed at once, constants
    # resident once in VMEM (nothing is double-buffered / re-fetched per step).
    sqerr = pl.pallas_call(
        kernel,
        out_shape=jax.ShapeDtypeStruct((cp, bsz * t), jnp.float32),
        compiler_params=pltpu.CompilerParams(vmem_limit_bytes=64 * 1024 * 1024),
    )(x_slab, *ops)

    # padded channel rows are exactly zero in both x and x_hat -> contribute 0
    return jnp.sum(sqerr) / (bsz * cin * t)


# ----------------------------------------------------------------------------
# plain-JAX reference (for numerical validation only)
# ----------------------------------------------------------------------------
def reference_forward(data, params, window, duration):
    x = form_input(data)
    pad = (params["w1"].shape[-1] - 1) // 2

    def conv(xn, w, bvec):
        out = jax.lax.conv_general_dilated(
            xn, w, window_strides=(1,), padding=[(pad, pad)],
            dimension_numbers=("NCH", "OIH", "NCH"),
            precision=jax.lax.Precision.HIGHEST)
        return out + bvec.reshape(1, -1, 1)

    def ln(xn, g, bt):
        mu = xn.mean(-1, keepdims=True)
        var = ((xn - mu) ** 2).mean(-1, keepdims=True)
        return (xn - mu) / jnp.sqrt(var + 1e-5) * g.reshape(1, 1, -1) + bt.reshape(1, 1, -1)

    elu = lambda v: jnp.where(v > 0, v, jnp.exp(jnp.minimum(v, 0.0)) - 1.0)

    y = jnp.transpose(x, (0, 2, 1))                               # (B, C_in, T)
    h = elu(ln(conv(y, params["w1"], params["b1"]), params["g1"], params["be1"]))
    feat = conv(h, params["w2"], params["b2"])                    # (B, C_out, T)

    rfft = jnp.fft.rfft(feat, axis=-1)
    power = jnp.abs(rfft)[:, :, 1:] ** 2
    freqs = jnp.arange(1, window // 2 + 1, dtype=jnp.float32) / duration
    freq = jnp.sum(freqs * power, -1) / jnp.sum(power, -1)
    amp = 2.0 * jnp.sqrt(jnp.sum(power, -1)) / window
    offset = jnp.real(rfft)[:, :, 0] / window

    v0 = jnp.sum(feat * params["wfc0"][None], -1) + params["bfc"][None, :, 0]
    v1 = jnp.sum(feat * params["wfc1"][None], -1) + params["bfc"][None, :, 1]
    p = jnp.arctan2(v1, v0) / jnp.pi

    args = jnp.linspace(-duration, duration, window, dtype=jnp.float32)
    z = (amp[..., None] * jnp.sin(jnp.pi * (freq[..., None] * args + p[..., None]))
         + offset[..., None])                                     # (B, C_out, T)

    h2 = elu(ln(conv(z, params["w3"], params["b3"]), params["g2"], params["be2"]))
    x_hat = conv(h2, params["w4"], params["b4"])                  # (B, C_in, T)
    return jnp.mean((x_hat - y) ** 2)


# ----------------------------------------------------------------------------
if __name__ == "__main__":
    B, WINDOW, KSIZE, J, DURATION = 2, 32, 9, 16, 4.0
    OUT_CHANNELS = 4

    key = jax.random.PRNGKey(0)
    k_jpos, k_acc, k_params = jax.random.split(key, 3)
    data = {
        "jpos": jax.random.normal(k_jpos, (B, WINDOW, J, 3), jnp.float32),
        "acc": jax.random.normal(k_acc, (B, WINDOW, 1, 3), jnp.float32),
    }
    in_channels = 3 * data["acc"].shape[2] + 3                    # acc features + head velocity

    params = make_params(k_params, in_channels, OUT_CHANNELS, KSIZE, WINDOW)
    buffers = make_buffers(WINDOW, DURATION)

    loss = jax.block_until_ready(phase_embedding_forward(data, params, buffers))
    ref = jax.block_until_ready(reference_forward(data, params, WINDOW, DURATION))

    assert jnp.isfinite(loss), f"non-finite loss: {loss}"
    rel = abs(float(loss) - float(ref)) / max(1.0, abs(float(ref)))
    assert rel < 5e-2, f"kernel loss {float(loss)} vs reference {float(ref)} (rel err {rel})"

    print("KERNEL_OK")
</pallas_src>

<mosaic_0001>
module attributes {stable_mosaic.version = 11 : i64} {
  func.func @_phase_embedding_kernel(%arg0: memref<8x64xf32, #tpu.memory_space<vmem>>, %arg1: memref<8x72xf32, #tpu.memory_space<vmem>>, %arg2: memref<8x1xf32, #tpu.memory_space<vmem>>, %arg3: memref<1x32xf32, #tpu.memory_space<vmem>>, %arg4: memref<1x32xf32, #tpu.memory_space<vmem>>, %arg5: memref<8x72xf32, #tpu.memory_space<vmem>>, %arg6: memref<8x1xf32, #tpu.memory_space<vmem>>, %arg7: memref<16x32xf32, #tpu.memory_space<vmem>>, %arg8: memref<16x32xf32, #tpu.memory_space<vmem>>, %arg9: memref<16x2xf32, #tpu.memory_space<vmem>>, %arg10: memref<8x72xf32, #tpu.memory_space<vmem>>, %arg11: memref<8x1xf32, #tpu.memory_space<vmem>>, %arg12: memref<1x32xf32, #tpu.memory_space<vmem>>, %arg13: memref<1x32xf32, #tpu.memory_space<vmem>>, %arg14: memref<8x72xf32, #tpu.memory_space<vmem>>, %arg15: memref<8x1xf32, #tpu.memory_space<vmem>>, %arg16: memref<32x34xf32, #tpu.memory_space<vmem>>, %arg17: memref<1x16xf32, #tpu.memory_space<vmem>>, %arg18: memref<1x32xf32, #tpu.memory_space<vmem>>, %arg19: memref<8x64xf32, #tpu.memory_space<vmem>>) attributes {dimension_semantics = [], scalar_prefetch = 0 : i64, scratch_operands = 0 : i64, tpu.core_type = #tpu.core_type<tc>} {
    %c0 = arith.constant 0 : index
    %c0_0 = arith.constant 0 : index
    %0 = vector.load %arg0[%c0, %c0_0] : memref<8x64xf32, #tpu.memory_space<vmem>>, vector<8x64xf32>
    %c0_1 = arith.constant 0 : index
    %c0_2 = arith.constant 0 : index
    %1 = vector.load %arg1[%c0_1, %c0_2] : memref<8x72xf32, #tpu.memory_space<vmem>>, vector<8x72xf32>
    %c0_3 = arith.constant 0 : index
    %c0_4 = arith.constant 0 : index
    %2 = vector.load %arg2[%c0_3, %c0_4] : memref<8x1xf32, #tpu.memory_space<vmem>>, vector<8x1xf32>
    %cst = arith.constant 0.000000e+00 : f32
    %3 = vector.broadcast %cst : f32 to vector<8x4xf32>
    %4 = vector.extract_strided_slice %0 {offsets = [0, 0], sizes = [8, 32], strides = [1, 1]} : vector<8x64xf32> to vector<8x32xf32>
    %5 = tpu.concatenate %3, %4, %3 in 1 : vector<8x4xf32>, vector<8x32xf32>, vector<8x4xf32> -> vector<8x40xf32>
    %6 = vector.extract_strided_slice %5 {offsets = [0, 0], sizes = [8, 32], strides = [1, 1]} : vector<8x40xf32> to vector<8x32xf32>
    %7 = vector.extract_strided_slice %5 {offsets = [0, 1], sizes = [8, 32], strides = [1, 1]} : vector<8x40xf32> to vector<8x32xf32>
    %8 = vector.extract_strided_slice %5 {offsets = [0, 2], sizes = [8, 32], strides = [1, 1]} : vector<8x40xf32> to vector<8x32xf32>
    %9 = vector.extract_strided_slice %5 {offsets = [0, 3], sizes = [8, 32], strides = [1, 1]} : vector<8x40xf32> to vector<8x32xf32>
    %10 = vector.extract_strided_slice %5 {offsets = [0, 4], sizes = [8, 32], strides = [1, 1]} : vector<8x40xf32> to vector<8x32xf32>
    %11 = vector.extract_strided_slice %5 {offsets = [0, 5], sizes = [8, 32], strides = [1, 1]} : vector<8x40xf32> to vector<8x32xf32>
    %12 = vector.extract_strided_slice %5 {offsets = [0, 6], sizes = [8, 32], strides = [1, 1]} : vector<8x40xf32> to vector<8x32xf32>
    %13 = vector.extract_strided_slice %5 {offsets = [0, 7], sizes = [8, 32], strides = [1, 1]} : vector<8x40xf32> to vector<8x32xf32>
    %14 = vector.extract_strided_slice %5 {offsets = [0, 8], sizes = [8, 32], strides = [1, 1]} : vector<8x40xf32> to vector<8x32xf32>
    %15 = tpu.concatenate %6, %7, %8, %9, %10, %11, %12, %13, %14 in 0 : vector<8x32xf32>, vector<8x32xf32>, vector<8x32xf32>, vector<8x32xf32>, vector<8x32xf32>, vector<8x32xf32>, vector<8x32xf32>, vector<8x32xf32>, vector<8x32xf32> -> vector<72x32xf32>
    %16 = vector.extract_strided_slice %0 {offsets = [0, 32], sizes = [8, 32], strides = [1, 1]} : vector<8x64xf32> to vector<8x32xf32>
    %17 = tpu.concatenate %3, %16, %3 in 1 : vector<8x4xf32>, vector<8x32xf32>, vector<8x4xf32> -> vector<8x40xf32>
    %18 = vector.extract_strided_slice %17 {offsets = [0, 0], sizes = [8, 32], strides = [1, 1]} : vector<8x40xf32> to vector<8x32xf32>
    %19 = vector.extract_strided_slice %17 {offsets = [0, 1], sizes = [8, 32], strides = [1, 1]} : vector<8x40xf32> to vector<8x32xf32>
    %20 = vector.extract_strided_slice %17 {offsets = [0, 2], sizes = [8, 32], strides = [1, 1]} : vector<8x40xf32> to vector<8x32xf32>
    %21 = vector.extract_strided_slice %17 {offsets = [0, 3], sizes = [8, 32], strides = [1, 1]} : vector<8x40xf32> to vector<8x32xf32>
    %22 = vector.extract_strided_slice %17 {offsets = [0, 4], sizes = [8, 32], strides = [1, 1]} : vector<8x40xf32> to vector<8x32xf32>
    %23 = vector.extract_strided_slice %17 {offsets = [0, 5], sizes = [8, 32], strides = [1, 1]} : vector<8x40xf32> to vector<8x32xf32>
    %24 = vector.extract_strided_slice %17 {offsets = [0, 6], sizes = [8, 32], strides = [1, 1]} : vector<8x40xf32> to vector<8x32xf32>
    %25 = vector.extract_strided_slice %17 {offsets = [0, 7], sizes = [8, 32], strides = [1, 1]} : vector<8x40xf32> to vector<8x32xf32>
    %26 = vector.extract_strided_slice %17 {offsets = [0, 8], sizes = [8, 32], strides = [1, 1]} : vector<8x40xf32> to vector<8x32xf32>
    %27 = tpu.concatenate %18, %19, %20, %21, %22, %23, %24, %25, %26 in 0 : vector<8x32xf32>, vector<8x32xf32>, vector<8x32xf32>, vector<8x32xf32>, vector<8x32xf32>, vector<8x32xf32>, vector<8x32xf32>, vector<8x32xf32>, vector<8x32xf32> -> vector<72x32xf32>
    %28 = tpu.concatenate %15, %27 in 1 : vector<72x32xf32>, vector<72x32xf32> -> vector<72x64xf32>
    %cst_5 = arith.constant dense<0.000000e+00> : vector<8x64xf32>
    %29 = tpu.matmul %1, %28, %cst_5 {dimension_numbers = #tpu.dot_dimension_numbers<[1], [0], [0], [1], [0, 0, 1, 1], [], []>} : vector<8x72xf32>, vector<72x64xf32>, vector<8x64xf32> -> vector<8x64xf32>
    %30 = vector.broadcast %2 : vector<8x1xf32> to vector<8x64xf32>
    %31 = arith.addf %29, %30 : vector<8x64xf32>
    %c0_6 = arith.constant 0 : index
    %c0_7 = arith.constant 0 : index
    %32 = vector.load %arg3[%c0_6, %c0_7] : memref<1x32xf32, #tpu.memory_space<vmem>>, vector<1x32xf32>
    %c0_8 = arith.constant 0 : index
    %c0_9 = arith.constant 0 : index
    %33 = vector.load %arg4[%c0_8, %c0_9] : memref<1x32xf32, #tpu.memory_space<vmem>>, vector<1x32xf32>
    %34 = vector.extract_strided_slice %31 {offsets = [0, 0], sizes = [8, 32], strides = [1, 1]} : vector<8x64xf32> to vector<8x32xf32>
    %cst_10 = arith.constant dense<0.000000e+00> : vector<8xf32>
    %35 = vector.multi_reduction <add>, %34, %cst_10 [1] : vector<8x32xf32> to vector<8xf32>
    %36 = vector.shape_cast %35 : vector<8xf32> to vector<8x1xf32>
    %cst_11 = arith.constant 3.200000e+01 : f32
    %37 = vector.broadcast %cst_11 : f32 to vector<8x1xf32>
    %38 = arith.divf %36, %37 : vector<8x1xf32>
    %39 = vector.broadcast %38 : vector<8x1xf32> to vector<8x32xf32>
    %40 = arith.subf %34, %39 : vector<8x32xf32>
    %41 = arith.mulf %40, %40 : vector<8x32xf32>
    %cst_12 = arith.constant dense<0.000000e+00> : vector<8xf32>
    %42 = vector.multi_reduction <add>, %41, %cst_12 [1] : vector<8x32xf32> to vector<8xf32>
    %43 = vector.shape_cast %42 : vector<8xf32> to vector<8x1xf32>
    %cst_13 = arith.constant 3.200000e+01 : f32
    %44 = vector.broadcast %cst_13 : f32 to vector<8x1xf32>
    %45 = arith.divf %43, %44 : vector<8x1xf32>
    %46 = vector.broadcast %38 : vector<8x1xf32> to vector<8x32xf32>
    %47 = arith.subf %34, %46 : vector<8x32xf32>
    %cst_14 = arith.constant 9.99999974E-6 : f32
    %48 = vector.broadcast %cst_14 : f32 to vector<8x1xf32>
    %49 = arith.addf %45, %48 : vector<8x1xf32>
    %50 = math.rsqrt %49 : vector<8x1xf32>
    %51 = vector.broadcast %50 : vector<8x1xf32> to vector<8x32xf32>
    %52 = arith.mulf %47, %51 : vector<8x32xf32>
    %53 = vector.broadcast %32 : vector<1x32xf32> to vector<8x32xf32>
    %54 = arith.mulf %52, %53 : vector<8x32xf32>
    %55 = vector.broadcast %33 : vector<1x32xf32> to vector<8x32xf32>
    %56 = arith.addf %54, %55 : vector<8x32xf32>
    %57 = vector.extract_strided_slice %31 {offsets = [0, 32], sizes = [8, 32], strides = [1, 1]} : vector<8x64xf32> to vector<8x32xf32>
    %cst_15 = arith.constant dense<0.000000e+00> : vector<8xf32>
    %58 = vector.multi_reduction <add>, %57, %cst_15 [1] : vector<8x32xf32> to vector<8xf32>
    %59 = vector.shape_cast %58 : vector<8xf32> to vector<8x1xf32>
    %cst_16 = arith.constant 3.200000e+01 : f32
    %60 = vector.broadcast %cst_16 : f32 to vector<8x1xf32>
    %61 = arith.divf %59, %60 : vector<8x1xf32>
    %62 = vector.broadcast %61 : vector<8x1xf32> to vector<8x32xf32>
    %63 = arith.subf %57, %62 : vector<8x32xf32>
    %64 = arith.mulf %63, %63 : vector<8x32xf32>
    %cst_17 = arith.constant dense<0.000000e+00> : vector<8xf32>
    %65 = vector.multi_reduction <add>, %64, %cst_17 [1] : vector<8x32xf32> to vector<8xf32>
    %66 = vector.shape_cast %65 : vector<8xf32> to vector<8x1xf32>
    %cst_18 = arith.constant 3.200000e+01 : f32
    %67 = vector.broadcast %cst_18 : f32 to vector<8x1xf32>
    %68 = arith.divf %66, %67 : vector<8x1xf32>
    %69 = vector.broadcast %61 : vector<8x1xf32> to vector<8x32xf32>
    %70 = arith.subf %57, %69 : vector<8x32xf32>
    %cst_19 = arith.constant 9.99999974E-6 : f32
    %71 = vector.broadcast %cst_19 : f32 to vector<8x1xf32>
    %72 = arith.addf %68, %71 : vector<8x1xf32>
    %73 = math.rsqrt %72 : vector<8x1xf32>
    %74 = vector.broadcast %73 : vector<8x1xf32> to vector<8x32xf32>
    %75 = arith.mulf %70, %74 : vector<8x32xf32>
    %76 = vector.broadcast %32 : vector<1x32xf32> to vector<8x32xf32>
    %77 = arith.mulf %75, %76 : vector<8x32xf32>
    %78 = vector.broadcast %33 : vector<1x32xf32> to vector<8x32xf32>
    %79 = arith.addf %77, %78 : vector<8x32xf32>
    %80 = tpu.concatenate %56, %79 in 1 : vector<8x32xf32>, vector<8x32xf32> -> vector<8x64xf32>
    %cst_20 = arith.constant 0.000000e+00 : f32
    %81 = vector.broadcast %cst_20 : f32 to vector<8x64xf32>
    %82 = arith.cmpf ogt, %80, %81 : vector<8x64xf32>
    %cst_21 = arith.constant 0.000000e+00 : f32
    %83 = vector.broadcast %cst_21 : f32 to vector<8x64xf32>
    %84 = arith.minimumf %80, %83 : vector<8x64xf32>
    %85 = math.exp %84 : vector<8x64xf32>
    %cst_22 = arith.constant 1.000000e+00 : f32
    %86 = vector.broadcast %cst_22 : f32 to vector<8x64xf32>
    %87 = arith.subf %85, %86 : vector<8x64xf32>
    %88 = arith.select %82, %80, %87 : vector<8x64xi1>, vector<8x64xf32>
    %c0_23 = arith.constant 0 : index
    %c0_24 = arith.constant 0 : index
    %89 = vector.load %arg5[%c0_23, %c0_24] : memref<8x72xf32, #tpu.memory_space<vmem>>, vector<8x72xf32>
    %c0_25 = arith.constant 0 : index
    %c0_26 = arith.constant 0 : index
    %90 = vector.load %arg6[%c0_25, %c0_26] : memref<8x1xf32, #tpu.memory_space<vmem>>, vector<8x1xf32>
    %cst_27 = arith.constant 0.000000e+00 : f32
    %91 = vector.broadcast %cst_27 : f32 to vector<8x4xf32>
    %92 = vector.extract_strided_slice %88 {offsets = [0, 0], sizes = [8, 32], strides = [1, 1]} : vector<8x64xf32> to vector<8x32xf32>
    %93 = tpu.concatenate %91, %92, %91 in 1 : vector<8x4xf32>, vector<8x32xf32>, vector<8x4xf32> -> vector<8x40xf32>
    %94 = vector.extract_strided_slice %93 {offsets = [0, 0], sizes = [8, 32], strides = [1, 1]} : vector<8x40xf32> to vector<8x32xf32>
    %95 = vector.extract_strided_slice %93 {offsets = [0, 1], sizes = [8, 32], strides = [1, 1]} : vector<8x40xf32> to vector<8x32xf32>
    %96 = vector.extract_strided_slice %93 {offsets = [0, 2], sizes = [8, 32], strides = [1, 1]} : vector<8x40xf32> to vector<8x32xf32>
    %97 = vector.extract_strided_slice %93 {offsets = [0, 3], sizes = [8, 32], strides = [1, 1]} : vector<8x40xf32> to vector<8x32xf32>
    %98 = vector.extract_strided_slice %93 {offsets = [0, 4], sizes = [8, 32], strides = [1, 1]} : vector<8x40xf32> to vector<8x32xf32>
    %99 = vector.extract_strided_slice %93 {offsets = [0, 5], sizes = [8, 32], strides = [1, 1]} : vector<8x40xf32> to vector<8x32xf32>
    %100 = vector.extract_strided_slice %93 {offsets = [0, 6], sizes = [8, 32], strides = [1, 1]} : vector<8x40xf32> to vector<8x32xf32>
    %101 = vector.extract_strided_slice %93 {offsets = [0, 7], sizes = [8, 32], strides = [1, 1]} : vector<8x40xf32> to vector<8x32xf32>
    %102 = vector.extract_strided_slice %93 {offsets = [0, 8], sizes = [8, 32], strides = [1, 1]} : vector<8x40xf32> to vector<8x32xf32>
    %103 = tpu.concatenate %94, %95, %96, %97, %98, %99, %100, %101, %102 in 0 : vector<8x32xf32>, vector<8x32xf32>, vector<8x32xf32>, vector<8x32xf32>, vector<8x32xf32>, vector<8x32xf32>, vector<8x32xf32>, vector<8x32xf32>, vector<8x32xf32> -> vector<72x32xf32>
    %104 = vector.extract_strided_slice %88 {offsets = [0, 32], sizes = [8, 32], strides = [1, 1]} : vector<8x64xf32> to vector<8x32xf32>
    %105 = tpu.concatenate %91, %104, %91 in 1 : vector<8x4xf32>, vector<8x32xf32>, vector<8x4xf32> -> vector<8x40xf32>
    %106 = vector.extract_strided_slice %105 {offsets = [0, 0], sizes = [8, 32], strides = [1, 1]} : vector<8x40xf32> to vector<8x32xf32>
    %107 = vector.extract_strided_slice %105 {offsets = [0, 1], sizes = [8, 32], strides = [1, 1]} : vector<8x40xf32> to vector<8x32xf32>
    %108 = vector.extract_strided_slice %105 {offsets = [0, 2], sizes = [8, 32], strides = [1, 1]} : vector<8x40xf32> to vector<8x32xf32>
    %109 = vector.extract_strided_slice %105 {offsets = [0, 3], sizes = [8, 32], strides = [1, 1]} : vector<8x40xf32> to vector<8x32xf32>
    %110 = vector.extract_strided_slice %105 {offsets = [0, 4], sizes = [8, 32], strides = [1, 1]} : vector<8x40xf32> to vector<8x32xf32>
    %111 = vector.extract_strided_slice %105 {offsets = [0, 5], sizes = [8, 32], strides = [1, 1]} : vector<8x40xf32> to vector<8x32xf32>
    %112 = vector.extract_strided_slice %105 {offsets = [0, 6], sizes = [8, 32], strides = [1, 1]} : vector<8x40xf32> to vector<8x32xf32>
    %113 = vector.extract_strided_slice %105 {offsets = [0, 7], sizes = [8, 32], strides = [1, 1]} : vector<8x40xf32> to vector<8x32xf32>
    %114 = vector.extract_strided_slice %105 {offsets = [0, 8], sizes = [8, 32], strides = [1, 1]} : vector<8x40xf32> to vector<8x32xf32>
    %115 = tpu.concatenate %106, %107, %108, %109, %110, %111, %112, %113, %114 in 0 : vector<8x32xf32>, vector<8x32xf32>, vector<8x32xf32>, vector<8x32xf32>, vector<8x32xf32>, vector<8x32xf32>, vector<8x32xf32>, vector<8x32xf32>, vector<8x32xf32> -> vector<72x32xf32>
    %116 = tpu.concatenate %103, %115 in 1 : vector<72x32xf32>, vector<72x32xf32> -> vector<72x64xf32>
    %cst_28 = arith.constant dense<0.000000e+00> : vector<8x64xf32>
    %117 = tpu.matmul %89, %116, %cst_28 {dimension_numbers = #tpu.dot_dimension_numbers<[1], [0], [0], [1], [0, 0, 1, 1], [], []>} : vector<8x72xf32>, vector<72x64xf32>, vector<8x64xf32> -> vector<8x64xf32>
    %118 = vector.broadcast %90 : vector<8x1xf32> to vector<8x64xf32>
    %119 = arith.addf %117, %118 : vector<8x64xf32>
    %120 = vector.extract_strided_slice %119 {offsets = [0, 0], sizes = [8, 32], strides = [1, 1]} : vector<8x64xf32> to vector<8x32xf32>
    %121 = vector.extract_strided_slice %119 {offsets = [0, 32], sizes = [8, 32], strides = [1, 1]} : vector<8x64xf32> to vector<8x32xf32>
    %122 = tpu.concatenate %120, %121 in 0 : vector<8x32xf32>, vector<8x32xf32> -> vector<16x32xf32>
    %c0_29 = arith.constant 0 : index
    %c0_30 = arith.constant 0 : index
    %123 = vector.load %arg16[%c0_29, %c0_30] : memref<32x34xf32, #tpu.memory_space<vmem>>, vector<32x34xf32>
    %cst_31 = arith.constant dense<0.000000e+00> : vector<16x34xf32>
    %124 = tpu.matmul %122, %123, %cst_31 {dimension_numbers = #tpu.dot_dimension_numbers<[1], [0], [0], [1], [0, 0, 1, 1], [], []>} : vector<16x32xf32>, vector<32x34xf32>, vector<16x34xf32> -> vector<16x34xf32>
    %125 = vector.extract_strided_slice %124 {offsets = [0, 0], sizes = [16, 17], strides = [1, 1]} : vector<16x34xf32> to vector<16x17xf32>
    %126 = vector.extract_strided_slice %124 {offsets = [0, 17], sizes = [16, 17], strides = [1, 1]} : vector<16x34xf32> to vector<16x17xf32>
    %127 = vector.extract_strided_slice %125 {offsets = [0, 1], sizes = [16, 16], strides = [1, 1]} : vector<16x17xf32> to vector<16x16xf32>
    %128 = arith.mulf %127, %127 : vector<16x16xf32>
    %129 = vector.extract_strided_slice %126 {offsets = [0, 1], sizes = [16, 16], strides = [1, 1]} : vector<16x17xf32> to vector<16x16xf32>
    %130 = arith.mulf %129, %129 : vector<16x16xf32>
    %131 = arith.addf %128, %130 : vector<16x16xf32>
    %cst_32 = arith.constant dense<0.000000e+00> : vector<16xf32>
    %132 = vector.multi_reduction <add>, %131, %cst_32 [1] : vector<16x16xf32> to vector<16xf32>
    %133 = vector.shape_cast %132 : vector<16xf32> to vector<16x1xf32>
    %c0_33 = arith.constant 0 : index
    %c0_34 = arith.constant 0 : index
    %134 = vector.load %arg17[%c0_33, %c0_34] : memref<1x16xf32, #tpu.memory_space<vmem>>, vector<1x16xf32>
    %135 = vector.broadcast %134 : vector<1x16xf32> to vector<16x16xf32>
    %136 = arith.mulf %135, %131 : vector<16x16xf32>
    %cst_35 = arith.constant dense<0.000000e+00> : vector<16xf32>
    %137 = vector.multi_reduction <add>, %136, %cst_35 [1] : vector<16x16xf32> to vector<16xf32>
    %138 = vector.shape_cast %137 : vector<16xf32> to vector<16x1xf32>
    %cst_36 = arith.constant 9.99999996E-13 : f32
    %139 = vector.broadcast %cst_36 : f32 to vector<16x1xf32>
    %140 = arith.maximumf %133, %139 : vector<16x1xf32>
    %141 = arith.divf %138, %140 : vector<16x1xf32>
    %142 = math.sqrt %133 : vector<16x1xf32>
    %cst_37 = arith.constant 2.000000e+00 : f32
    %143 = vector.broadcast %cst_37 : f32 to vector<16x1xf32>
    %144 = arith.mulf %143, %142 : vector<16x1xf32>
    %cst_38 = arith.constant 3.200000e+01 : f32
    %145 = vector.broadcast %cst_38 : f32 to vector<16x1xf32>
    %146 = arith.divf %144, %145 : vector<16x1xf32>
    %147 = vector.extract_strided_slice %125 {offsets = [0, 0], sizes = [16, 1], strides = [1, 1]} : vector<16x17xf32> to vector<16x1xf32>
    %cst_39 = arith.constant 3.200000e+01 : f32
    %148 = vector.broadcast %cst_39 : f32 to vector<16x1xf32>
    %149 = arith.divf %147, %148 : vector<16x1xf32>
    %c0_40 = arith.constant 0 : index
    %c0_41 = arith.constant 0 : index
    %150 = vector.load %arg7[%c0_40, %c0_41] : memref<16x32xf32, #tpu.memory_space<vmem>>, vector<16x32xf32>
    %151 = arith.mulf %122, %150 : vector<16x32xf32>
    %cst_42 = arith.constant dense<0.000000e+00> : vector<16xf32>
    %152 = vector.multi_reduction <add>, %151, %cst_42 [1] : vector<16x32xf32> to vector<16xf32>
    %153 = vector.shape_cast %152 : vector<16xf32> to vector<16x1xf32>
    %c0_43 = arith.constant 0 : index
    %c0_44 = arith.constant 0 : index
    %154 = vector.load %arg9[%c0_43, %c0_44] : memref<16x2xf32, #tpu.memory_space<vmem>>, vector<16x1xf32>
    %155 = arith.addf %153, %154 : vector<16x1xf32>
    %c0_45 = arith.constant 0 : index
    %c0_46 = arith.constant 0 : index
    %156 = vector.load %arg8[%c0_45, %c0_46] : memref<16x32xf32, #tpu.memory_space<vmem>>, vector<16x32xf32>
    %157 = arith.mulf %122, %156 : vector<16x32xf32>
    %cst_47 = arith.constant dense<0.000000e+00> : vector<16xf32>
    %158 = vector.multi_reduction <add>, %157, %cst_47 [1] : vector<16x32xf32> to vector<16xf32>
    %159 = vector.shape_cast %158 : vector<16xf32> to vector<16x1xf32>
    %c0_48 = arith.constant 0 : index
    %c1 = arith.constant 1 : index
    %160 = vector.load %arg9[%c0_48, %c1] : memref<16x2xf32, #tpu.memory_space<vmem>>, vector<16x1xf32>
    %161 = arith.addf %159, %160 : vector<16x1xf32>
    %162 = math.atan2 %161, %155 : vector<16x1xf32>
    %cst_49 = arith.constant 3.14159274 : f32
    %163 = vector.broadcast %cst_49 : f32 to vector<16x1xf32>
    %164 = arith.divf %162, %163 : vector<16x1xf32>
    %c0_50 = arith.constant 0 : index
    %c0_51 = arith.constant 0 : index
    %165 = vector.load %arg18[%c0_50, %c0_51] : memref<1x32xf32, #tpu.memory_space<vmem>>, vector<1x32xf32>
    %166 = vector.broadcast %141 : vector<16x1xf32> to vector<16x32xf32>
    %167 = vector.broadcast %165 : vector<1x32xf32> to vector<16x32xf32>
    %168 = arith.mulf %166, %167 : vector<16x32xf32>
    %169 = vector.broadcast %164 : vector<16x1xf32> to vector<16x32xf32>
    %170 = arith.addf %168, %169 : vector<16x32xf32>
    %cst_52 = arith.constant 3.14159274 : f32
    %171 = vector.broadcast %cst_52 : f32 to vector<16x32xf32>
    %172 = arith.mulf %171, %170 : vector<16x32xf32>
    %173 = math.sin %172 : vector<16x32xf32>
    %174 = vector.broadcast %146 : vector<16x1xf32> to vector<16x32xf32>
    %175 = arith.mulf %174, %173 : vector<16x32xf32>
    %176 = vector.broadcast %149 : vector<16x1xf32> to vector<16x32xf32>
    %177 = arith.addf %175, %176 : vector<16x32xf32>
    %178 = vector.extract_strided_slice %177 {offsets = [0, 0], sizes = [8, 32], strides = [1, 1]} : vector<16x32xf32> to vector<8x32xf32>
    %179 = vector.extract_strided_slice %177 {offsets = [8, 0], sizes = [8, 32], strides = [1, 1]} : vector<16x32xf32> to vector<8x32xf32>
    %180 = tpu.concatenate %178, %179 in 1 : vector<8x32xf32>, vector<8x32xf32> -> vector<8x64xf32>
    %c0_53 = arith.constant 0 : index
    %c0_54 = arith.constant 0 : index
    %181 = vector.load %arg10[%c0_53, %c0_54] : memref<8x72xf32, #tpu.memory_space<vmem>>, vector<8x72xf32>
    %c0_55 = arith.constant 0 : index
    %c0_56 = arith.constant 0 : index
    %182 = vector.load %arg11[%c0_55, %c0_56] : memref<8x1xf32, #tpu.memory_space<vmem>>, vector<8x1xf32>
    %cst_57 = arith.constant 0.000000e+00 : f32
    %183 = vector.broadcast %cst_57 : f32 to vector<8x4xf32>
    %184 = vector.extract_strided_slice %180 {offsets = [0, 0], sizes = [8, 32], strides = [1, 1]} : vector<8x64xf32> to vector<8x32xf32>
    %185 = tpu.concatenate %183, %184, %183 in 1 : vector<8x4xf32>, vector<8x32xf32>, vector<8x4xf32> -> vector<8x40xf32>
    %186 = vector.extract_strided_slice %185 {offsets = [0, 0], sizes = [8, 32], strides = [1, 1]} : vector<8x40xf32> to vector<8x32xf32>
    %187 = vector.extract_strided_slice %185 {offsets = [0, 1], sizes = [8, 32], strides = [1, 1]} : vector<8x40xf32> to vector<8x32xf32>
    %188 = vector.extract_strided_slice %185 {offsets = [0, 2], sizes = [8, 32], strides = [1, 1]} : vector<8x40xf32> to vector<8x32xf32>
    %189 = vector.extract_strided_slice %185 {offsets = [0, 3], sizes = [8, 32], strides = [1, 1]} : vector<8x40xf32> to vector<8x32xf32>
    %190 = vector.extract_strided_slice %185 {offsets = [0, 4], sizes = [8, 32], strides = [1, 1]} : vector<8x40xf32> to vector<8x32xf32>
    %191 = vector.extract_strided_slice %185 {offsets = [0, 5], sizes = [8, 32], strides = [1, 1]} : vector<8x40xf32> to vector<8x32xf32>
    %192 = vector.extract_strided_slice %185 {offsets = [0, 6], sizes = [8, 32], strides = [1, 1]} : vector<8x40xf32> to vector<8x32xf32>
    %193 = vector.extract_strided_slice %185 {offsets = [0, 7], sizes = [8, 32], strides = [1, 1]} : vector<8x40xf32> to vector<8x32xf32>
    %194 = vector.extract_strided_slice %185 {offsets = [0, 8], sizes = [8, 32], strides = [1, 1]} : vector<8x40xf32> to vector<8x32xf32>
    %195 = tpu.concatenate %186, %187, %188, %189, %190, %191, %192, %193, %194 in 0 : vector<8x32xf32>, vector<8x32xf32>, vector<8x32xf32>, vector<8x32xf32>, vector<8x32xf32>, vector<8x32xf32>, vector<8x32xf32>, vector<8x32xf32>, vector<8x32xf32> -> vector<72x32xf32>
    %196 = vector.extract_strided_slice %180 {offsets = [0, 32], sizes = [8, 32], strides = [1, 1]} : vector<8x64xf32> to vector<8x32xf32>
    %197 = tpu.concatenate %183, %196, %183 in 1 : vector<8x4xf32>, vector<8x32xf32>, vector<8x4xf32> -> vector<8x40xf32>
    %198 = vector.extract_strided_slice %197 {offsets = [0, 0], sizes = [8, 32], strides = [1, 1]} : vector<8x40xf32> to vector<8x32xf32>
    %199 = vector.extract_strided_slice %197 {offsets = [0, 1], sizes = [8, 32], strides = [1, 1]} : vector<8x40xf32> to vector<8x32xf32>
    %200 = vector.extract_strided_slice %197 {offsets = [0, 2], sizes = [8, 32], strides = [1, 1]} : vector<8x40xf32> to vector<8x32xf32>
    %201 = vector.extract_strided_slice %197 {offsets = [0, 3], sizes = [8, 32], strides = [1, 1]} : vector<8x40xf32> to vector<8x32xf32>
    %202 = vector.extract_strided_slice %197 {offsets = [0, 4], sizes = [8, 32], strides = [1, 1]} : vector<8x40xf32> to vector<8x32xf32>
    %203 = vector.extract_strided_slice %197 {offsets = [0, 5], sizes = [8, 32], strides = [1, 1]} : vector<8x40xf32> to vector<8x32xf32>
    %204 = vector.extract_strided_slice %197 {offsets = [0, 6], sizes = [8, 32], strides = [1, 1]} : vector<8x40xf32> to vector<8x32xf32>
    %205 = vector.extract_strided_slice %197 {offsets = [0, 7], sizes = [8, 32], strides = [1, 1]} : vector<8x40xf32> to vector<8x32xf32>
    %206 = vector.extract_strided_slice %197 {offsets = [0, 8], sizes = [8, 32], strides = [1, 1]} : vector<8x40xf32> to vector<8x32xf32>
    %207 = tpu.concatenate %198, %199, %200, %201, %202, %203, %204, %205, %206 in 0 : vector<8x32xf32>, vector<8x32xf32>, vector<8x32xf32>, vector<8x32xf32>, vector<8x32xf32>, vector<8x32xf32>, vector<8x32xf32>, vector<8x32xf32>, vector<8x32xf32> -> vector<72x32xf32>
    %208 = tpu.concatenate %195, %207 in 1 : vector<72x32xf32>, vector<72x32xf32> -> vector<72x64xf32>
    %cst_58 = arith.constant dense<0.000000e+00> : vector<8x64xf32>
    %209 = tpu.matmul %181, %208, %cst_58 {dimension_numbers = #tpu.dot_dimension_numbers<[1], [0], [0], [1], [0, 0, 1, 1], [], []>} : vector<8x72xf32>, vector<72x64xf32>, vector<8x64xf32> -> vector<8x64xf32>
    %210 = vector.broadcast %182 : vector<8x1xf32> to vector<8x64xf32>
    %211 = arith.addf %209, %210 : vector<8x64xf32>
    %c0_59 = arith.constant 0 : index
    %c0_60 = arith.constant 0 : index
    %212 = vector.load %arg12[%c0_59, %c0_60] : memref<1x32xf32, #tpu.memory_space<vmem>>, vector<1x32xf32>
    %c0_61 = arith.constant 0 : index
    %c0_62 = arith.constant 0 : index
    %213 = vector.load %arg13[%c0_61, %c0_62] : memref<1x32xf32, #tpu.memory_space<vmem>>, vector<1x32xf32>
    %214 = vector.extract_strided_slice %211 {offsets = [0, 0], sizes = [8, 32], strides = [1, 1]} : vector<8x64xf32> to vector<8x32xf32>
    %cst_63 = arith.constant dense<0.000000e+00> : vector<8xf32>
    %215 = vector.multi_reduction <add>, %214, %cst_63 [1] : vector<8x32xf32> to vector<8xf32>
    %216 = vector.shape_cast %215 : vector<8xf32> to vector<8x1xf32>
    %cst_64 = arith.constant 3.200000e+01 : f32
    %217 = vector.broadcast %cst_64 : f32 to vector<8x1xf32>
    %218 = arith.divf %216, %217 : vector<8x1xf32>
    %219 = vector.broadcast %218 : vector<8x1xf32> to vector<8x32xf32>
    %220 = arith.subf %214, %219 : vector<8x32xf32>
    %221 = arith.mulf %220, %220 : vector<8x32xf32>
    %cst_65 = arith.constant dense<0.000000e+00> : vector<8xf32>
    %222 = vector.multi_reduction <add>, %221, %cst_65 [1] : vector<8x32xf32> to vector<8xf32>
    %223 = vector.shape_cast %222 : vector<8xf32> to vector<8x1xf32>
    %cst_66 = arith.constant 3.200000e+01 : f32
    %224 = vector.broadcast %cst_66 : f32 to vector<8x1xf32>
    %225 = arith.divf %223, %224 : vector<8x1xf32>
    %226 = vector.broadcast %218 : vector<8x1xf32> to vector<8x32xf32>
    %227 = arith.subf %214, %226 : vector<8x32xf32>
    %cst_67 = arith.constant 9.99999974E-6 : f32
    %228 = vector.broadcast %cst_67 : f32 to vector<8x1xf32>
    %229 = arith.addf %225, %228 : vector<8x1xf32>
    %230 = math.rsqrt %229 : vector<8x1xf32>
    %231 = vector.broadcast %230 : vector<8x1xf32> to vector<8x32xf32>
    %232 = arith.mulf %227, %231 : vector<8x32xf32>
    %233 = vector.broadcast %212 : vector<1x32xf32> to vector<8x32xf32>
    %234 = arith.mulf %232, %233 : vector<8x32xf32>
    %235 = vector.broadcast %213 : vector<1x32xf32> to vector<8x32xf32>
    %236 = arith.addf %234, %235 : vector<8x32xf32>
    %237 = vector.extract_strided_slice %211 {offsets = [0, 32], sizes = [8, 32], strides = [1, 1]} : vector<8x64xf32> to vector<8x32xf32>
    %cst_68 = arith.constant dense<0.000000e+00> : vector<8xf32>
    %238 = vector.multi_reduction <add>, %237, %cst_68 [1] : vector<8x32xf32> to vector<8xf32>
    %239 = vector.shape_cast %238 : vector<8xf32> to vector<8x1xf32>
    %cst_69 = arith.constant 3.200000e+01 : f32
    %240 = vector.broadcast %cst_69 : f32 to vector<8x1xf32>
    %241 = arith.divf %239, %240 : vector<8x1xf32>
    %242 = vector.broadcast %241 : vector<8x1xf32> to vector<8x32xf32>
    %243 = arith.subf %237, %242 : vector<8x32xf32>
    %244 = arith.mulf %243, %243 : vector<8x32xf32>
    %cst_70 = arith.constant dense<0.000000e+00> : vector<8xf32>
    %245 = vector.multi_reduction <add>, %244, %cst_70 [1] : vector<8x32xf32> to vector<8xf32>
    %246 = vector.shape_cast %245 : vector<8xf32> to vector<8x1xf32>
    %cst_71 = arith.constant 3.200000e+01 : f32
    %247 = vector.broadcast %cst_71 : f32 to vector<8x1xf32>
    %248 = arith.divf %246, %247 : vector<8x1xf32>
    %249 = vector.broadcast %241 : vector<8x1xf32> to vector<8x32xf32>
    %250 = arith.subf %237, %249 : vector<8x32xf32>
    %cst_72 = arith.constant 9.99999974E-6 : f32
    %251 = vector.broadcast %cst_72 : f32 to vector<8x1xf32>
    %252 = arith.addf %248, %251 : vector<8x1xf32>
    %253 = math.rsqrt %252 : vector<8x1xf32>
    %254 = vector.broadcast %253 : vector<8x1xf32> to vector<8x32xf32>
    %255 = arith.mulf %250, %254 : vector<8x32xf32>
    %256 = vector.broadcast %212 : vector<1x32xf32> to vector<8x32xf32>
    %257 = arith.mulf %255, %256 : vector<8x32xf32>
    %258 = vector.broadcast %213 : vector<1x32xf32> to vector<8x32xf32>
    %259 = arith.addf %257, %258 : vector<8x32xf32>
    %260 = tpu.concatenate %236, %259 in 1 : vector<8x32xf32>, vector<8x32xf32> -> vector<8x64xf32>
    %cst_73 = arith.constant 0.000000e+00 : f32
    %261 = vector.broadcast %cst_73 : f32 to vector<8x64xf32>
    %262 = arith.cmpf ogt, %260, %261 : vector<8x64xf32>
    %cst_74 = arith.constant 0.000000e+00 : f32
    %263 = vector.broadcast %cst_74 : f32 to vector<8x64xf32>
    %264 = arith.minimumf %260, %263 : vector<8x64xf32>
    %265 = math.exp %264 : vector<8x64xf32>
    %cst_75 = arith.constant 1.000000e+00 : f32
    %266 = vector.broadcast %cst_75 : f32 to vector<8x64xf32>
    %267 = arith.subf %265, %266 : vector<8x64xf32>
    %268 = arith.select %262, %260, %267 : vector<8x64xi1>, vector<8x64xf32>
    %c0_76 = arith.constant 0 : index
    %c0_77 = arith.constant 0 : index
    %269 = vector.load %arg14[%c0_76, %c0_77] : memref<8x72xf32, #tpu.memory_space<vmem>>, vector<8x72xf32>
    %c0_78 = arith.constant 0 : index
    %c0_79 = arith.constant 0 : index
    %270 = vector.load %arg15[%c0_78, %c0_79] : memref<8x1xf32, #tpu.memory_space<vmem>>, vector<8x1xf32>
    %cst_80 = arith.constant 0.000000e+00 : f32
    %271 = vector.broadcast %cst_80 : f32 to vector<8x4xf32>
    %272 = vector.extract_strided_slice %268 {offsets = [0, 0], sizes = [8, 32], strides = [1, 1]} : vector<8x64xf32> to vector<8x32xf32>
    %273 = tpu.concatenate %271, %272, %271 in 1 : vector<8x4xf32>, vector<8x32xf32>, vector<8x4xf32> -> vector<8x40xf32>
    %274 = vector.extract_strided_slice %273 {offsets = [0, 0], sizes = [8, 32], strides = [1, 1]} : vector<8x40xf32> to vector<8x32xf32>
    %275 = vector.extract_strided_slice %273 {offsets = [0, 1], sizes = [8, 32], strides = [1, 1]} : vector<8x40xf32> to vector<8x32xf32>
    %276 = vector.extract_strided_slice %273 {offsets = [0, 2], sizes = [8, 32], strides = [1, 1]} : vector<8x40xf32> to vector<8x32xf32>
    %277 = vector.extract_strided_slice %273 {offsets = [0, 3], sizes = [8, 32], strides = [1, 1]} : vector<8x40xf32> to vector<8x32xf32>
    %278 = vector.extract_strided_slice %273 {offsets = [0, 4], sizes = [8, 32], strides = [1, 1]} : vector<8x40xf32> to vector<8x32xf32>
    %279 = vector.extract_strided_slice %273 {offsets = [0, 5], sizes = [8, 32], strides = [1, 1]} : vector<8x40xf32> to vector<8x32xf32>
    %280 = vector.extract_strided_slice %273 {offsets = [0, 6], sizes = [8, 32], strides = [1, 1]} : vector<8x40xf32> to vector<8x32xf32>
    %281 = vector.extract_strided_slice %273 {offsets = [0, 7], sizes = [8, 32], strides = [1, 1]} : vector<8x40xf32> to vector<8x32xf32>
    %282 = vector.extract_strided_slice %273 {offsets = [0, 8], sizes = [8, 32], strides = [1, 1]} : vector<8x40xf32> to vector<8x32xf32>
    %283 = tpu.concatenate %274, %275, %276, %277, %278, %279, %280, %281, %282 in 0 : vector<8x32xf32>, vector<8x32xf32>, vector<8x32xf32>, vector<8x32xf32>, vector<8x32xf32>, vector<8x32xf32>, vector<8x32xf32>, vector<8x32xf32>, vector<8x32xf32> -> vector<72x32xf32>
    %284 = vector.extract_strided_slice %268 {offsets = [0, 32], sizes = [8, 32], strides = [1, 1]} : vector<8x64xf32> to vector<8x32xf32>
    %285 = tpu.concatenate %271, %284, %271 in 1 : vector<8x4xf32>, vector<8x32xf32>, vector<8x4xf32> -> vector<8x40xf32>
    %286 = vector.extract_strided_slice %285 {offsets = [0, 0], sizes = [8, 32], strides = [1, 1]} : vector<8x40xf32> to vector<8x32xf32>
    %287 = vector.extract_strided_slice %285 {offsets = [0, 1], sizes = [8, 32], strides = [1, 1]} : vector<8x40xf32> to vector<8x32xf32>
    %288 = vector.extract_strided_slice %285 {offsets = [0, 2], sizes = [8, 32], strides = [1, 1]} : vector<8x40xf32> to vector<8x32xf32>
    %289 = vector.extract_strided_slice %285 {offsets = [0, 3], sizes = [8, 32], strides = [1, 1]} : vector<8x40xf32> to vector<8x32xf32>
    %290 = vector.extract_strided_slice %285 {offsets = [0, 4], sizes = [8, 32], strides = [1, 1]} : vector<8x40xf32> to vector<8x32xf32>
    %291 = vector.extract_strided_slice %285 {offsets = [0, 5], sizes = [8, 32], strides = [1, 1]} : vector<8x40xf32> to vector<8x32xf32>
    %292 = vector.extract_strided_slice %285 {offsets = [0, 6], sizes = [8, 32], strides = [1, 1]} : vector<8x40xf32> to vector<8x32xf32>
    %293 = vector.extract_strided_slice %285 {offsets = [0, 7], sizes = [8, 32], strides = [1, 1]} : vector<8x40xf32> to vector<8x32xf32>
    %294 = vector.extract_strided_slice %285 {offsets = [0, 8], sizes = [8, 32], strides = [1, 1]} : vector<8x40xf32> to vector<8x32xf32>
    %295 = tpu.concatenate %286, %287, %288, %289, %290, %291, %292, %293, %294 in 0 : vector<8x32xf32>, vector<8x32xf32>, vector<8x32xf32>, vector<8x32xf32>, vector<8x32xf32>, vector<8x32xf32>, vector<8x32xf32>, vector<8x32xf32>, vector<8x32xf32> -> vector<72x32xf32>
    %296 = tpu.concatenate %283, %295 in 1 : vector<72x32xf32>, vector<72x32xf32> -> vector<72x64xf32>
    %cst_81 = arith.constant dense<0.000000e+00> : vector<8x64xf32>
    %297 = tpu.matmul %269, %296, %cst_81 {dimension_numbers = #tpu.dot_dimension_numbers<[1], [0], [0], [1], [0, 0, 1, 1], [], []>} : vector<8x72xf32>, vector<72x64xf32>, vector<8x64xf32> -> vector<8x64xf32>
    %298 = vector.broadcast %270 : vector<8x1xf32> to vector<8x64xf32>
    %299 = arith.addf %297, %298 : vector<8x64xf32>
    %300 = arith.subf %299, %0 : vector<8x64xf32>
    %301 = arith.mulf %300, %300 : vector<8x64xf32>
    %c0_82 = arith.constant 0 : index
    %c0_83 = arith.constant 0 : index
    %302 = vector.load %arg19[%c0_82, %c0_83] : memref<8x64xf32, #tpu.memory_space<vmem>>, vector<8x64xf32>
    tpu.vector_store %arg19[%c0_82, %c0_83], %301 {strides = array<i32>} : memref<8x64xf32, #tpu.memory_space<vmem>>, vector<8x64xf32>,
    return
  }
}

</mosaic_0001>

<bundles_post_ra>
// kernel: tpu_custom_call.1
= control target key start
LH: loop header
LB: loop body
LE: loop exit
PB: predicated region body
PF: predicated region fallthrough
CT: control target
= control target key end

     0   :  { %s3265_s0 = inlined_call_operand.hbm [shape: f32[8,64], index: 0, kind: input, shape index: {}]   ;;  %s3266_s1 = inlined_call_operand.hbm [shape: f32[8,72], index: 1, kind: input, shape index: {}]   ;;  %s3267_s2 = inlined_call_operand.hbm [shape: f32[8,1], index: 2, kind: input, shape index: {}]   ;;  %s3268_s3 = inlined_call_operand.hbm [shape: f32[1,32], index: 3, kind: input, shape index: {}]   ;;  %s3269_s4 = inlined_call_operand.hbm [shape: f32[1,32], index: 4, kind: input, shape index: {}]   ;;  %s3270_s5 = inlined_call_operand.hbm [shape: f32[8,72], index: 5, kind: input, shape index: {}]   ;;  %s3271_s6 = inlined_call_operand.hbm [shape: f32[8,1], index: 6, kind: input, shape index: {}]   ;;  %s3272_s7 = inlined_call_operand.hbm [shape: f32[16,32], index: 7, kind: input, shape index: {}]   ;;  %s3273_s8 = inlined_call_operand.hbm [shape: f32[16,32], index: 8, kind: input, shape index: {}]   ;;  %s3274_s9 = inlined_call_operand.hbm [shape: f32[16,2], index: 9, kind: input, shape index: {}]   ;;  %s3275_s10 = inlined_call_operand.hbm [shape: f32[8,72], index: 10, kind: input, shape index: {}]   ;;  %s3276_s11 = inlined_call_operand.hbm [shape: f32[8,1], index: 11, kind: input, shape index: {}]   ;;  %s3277_s12 = inlined_call_operand.hbm [shape: f32[1,32], index: 12, kind: input, shape index: {}]   ;;  %s3278_s13 = inlined_call_operand.hbm [shape: f32[1,32], index: 13, kind: input, shape index: {}]   ;;  %s3279_s14 = inlined_call_operand.hbm [shape: f32[8,72], index: 14, kind: input, shape index: {}]   ;;  %s3280_s15 = inlined_call_operand.hbm [shape: f32[8,1], index: 15, kind: input, shape index: {}]   ;;  %s3281_s16 = inlined_call_operand.hbm [shape: f32[32,34], index: 16, kind: input, shape index: {}]   ;;  %s3282_s17 = inlined_call_operand.hbm [shape: f32[1,16], index: 17, kind: input, shape index: {}]   ;;  %s3283_s18 = inlined_call_operand.hbm [shape: f32[1,32], index: 18, kind: input, shape index: {}]   ;;  %s3284_s19 = inlined_call_operand.hbm [shape: f32[8,64], index: 19, kind: output, shape index: {}]  }
   0x1   :  { %3289 = sst [smem:[#allocation44_spill]] %s3265_s0 }
   0x2   :  { %3290 = sst [smem:[#allocation45_spill]] %s3266_s1 }
   0x3   :  { %3291 = sst [smem:[#allocation46_spill]] %s3267_s2 }
   0x4   :  { %3292 = sst [smem:[#allocation47_spill]] %s3268_s3 }
   0x5   :  { %24 = vsyncpa [#allocation3], 0 }
   0x6   :  { %25 = vsyncpa [#allocation6], 0 }
   0x7   :  { %26 = vsyncpa [#allocation9], 0 }
   0x8   :  { %27 = vsyncpa [#allocation12], 0 }
   0x9   :  { %28 = vsyncpa [#allocation15], 0 }
   0xa   :  { %29 = vsyncpa [#allocation18], 0 }
   0xb   :  { %30 = vsyncpa [#allocation21], 0 }
   0xc   :  { %31 = vsyncpa [#allocation24], 0 }
   0xd   :  { %32 = vsyncpa [#allocation27], 0 }
   0xe   :  { %33 = vsyncpa [#allocation30], 0 }
   0xf   :  { %34 = vsyncpa [#allocation4], 0  ;;  %s2521_s0 = smov [#allocation5]   ;;  %s2522_s20 = smov [#allocation8]  }
  0x10   :  { %s51_s30 = sshll.u32 %s2521_s0, 4  ;;  %s71_s21 = sshll.u32 %s2522_s20, 4  ;;  %s52_s30 = int_to_ptr.vmem [resolvable:$true] %s51_s30  ;;  %s72_s21 = int_to_ptr.vmem [resolvable:$true] %s71_s21 }
  0x11   :  { %s3293_s2 = sld [smem:[#allocation45_spill]] }
  0x17   :  { %s2059_s23 = scalar_lea.hbm %s3293_s2, 128 }
  0x18   :  { %p2060_p0 = scmp.ne.s32.totalorder %s3293_s2, %s2059_s23  ;;  %p2063_p1 = scmp.lt.u32.totalorder %s2059_s23, %s3293_s2 }
  0x1a   :  { %p2065_p2 = pnand %p2063_p1, %p2060_p0 }
  0x1c   :  { %2068 = shalt.err (!%p2065_p2)
}
  0x1d   :  { %s2069_s27 = scalar_lea.vmem %s52_s30, 128  ;;  %p2074_p4 = scmp.lt.s32.totalorder %s52_s30, %s52_s30 }
  0x1e   :  { %p2070_p3 = scmp.ne.s32.totalorder %s52_s30, %s2069_s27  ;;  %p2075_p5 = scmp.lt.s32.totalorder %s2069_s27, %s2069_s27 }
  0x20   :  { %p2076_p6 = por %p2075_p5, %p2074_p4 }
  0x22   :  { %p2077_p7 = pnand %p2076_p6, %p2070_p3 }
  0x24   :  { %2080 = shalt.err (!%p2077_p7)
}
  0x25   :  { %54 = dma.hbm_to_vmem [thread:$0]  %s3293_s2, 128, %s52_s30, [#allocation6]  }
  0x26   :  { %s3294_s1 = sld [smem:[#allocation47_spill]] }
  0x2c   :  { %s2081_s22 = scalar_lea.hbm %s3294_s1, 16 }
  0x2d   :  { %p2082_p8 = scmp.ne.s32.totalorder %s3294_s1, %s2081_s22  ;;  %p2085_p9 = scmp.lt.u32.totalorder %s2081_s22, %s3294_s1 }
  0x2f   :  { %p2087_p10 = pnand %p2085_p9, %p2082_p8 }
  0x31   :  { %2090 = shalt.err (!%p2087_p10)
}
  0x32   :  { %s2091_s26 = scalar_lea.vmem %s72_s21, 16  ;;  %s2095_s27 = scalar_lea.vmem %s72_s21, 32 }
  0x33   :  { %p2092_p11 = scmp.ne.s32.totalorder %s72_s21, %s2091_s26  ;;  %p2096_p12 = scmp.lt.s32.totalorder %s72_s21, %s72_s21 }
  0x34   :  { %p2097_p13 = scmp.lt.s32.totalorder %s2095_s27, %s2091_s26 }
  0x36   :  { %p2098_p0 = por %p2097_p13, %p2096_p12 }
  0x38   :  { %p2099_p1 = pnand %p2098_p0, %p2092_p11 }
  0x3a   :  { %2102 = shalt.err (!%p2099_p1)
}
  0x3b   :  { %74 = dma.hbm_to_vmem [thread:$0]  %s3294_s1, 16, %s72_s21, [#allocation9]  }
  0x3c   :  { %s2523_s28 = smov [#allocation11]   ;;  %s2524_s0 = smov [#allocation14]  }
  0x3d   :  { %s91_s29 = sshll.u32 %s2523_s28, 4  ;;  %s110_s20 = sshll.u32 %s2524_s0, 4  ;;  %s92_s29 = int_to_ptr.vmem [resolvable:$true] %s91_s29  ;;  %s2693_s20 = int_to_ptr.vmem [resolvable:$true] %s110_s20 }
  0x3e   :  { %s2103_s25 = scalar_lea.hbm %s3270_s5, 128 }
  0x3f   :  { %p2104_p2 = scmp.ne.s32.totalorder %s3270_s5, %s2103_s25  ;;  %p2107_p3 = scmp.lt.u32.totalorder %s2103_s25, %s3270_s5 }
  0x41   :  { %p2109_p4 = pnand %p2107_p3, %p2104_p2 }
  0x43   :  { %2112 = shalt.err (!%p2109_p4)
}
  0x44   :  { %s2113_s21 = scalar_lea.vmem %s92_s29, 128  ;;  %p2118_p6 = scmp.lt.s32.totalorder %s92_s29, %s92_s29 }
  0x45   :  { %p2114_p5 = scmp.ne.s32.totalorder %s92_s29, %s2113_s21  ;;  %p2119_p7 = scmp.lt.s32.totalorder %s2113_s21, %s2113_s21 }
  0x47   :  { %p2120_p8 = por %p2119_p7, %p2118_p6 }
  0x49   :  { %p2121_p9 = pnand %p2120_p8, %p2114_p5 }
  0x4b   :  { %2124 = shalt.err (!%p2121_p9)
}
  0x4c   :  { %94 = dma.hbm_to_vmem [thread:$0]  %s3270_s5, 128, %s92_s29, [#allocation12]  }
  0x4d   :  { %s2125_s0 = scalar_lea.hbm %s3272_s7, 256 }
  0x4e   :  { %p2126_p10 = scmp.ne.s32.totalorder %s3272_s7, %s2125_s0  ;;  %p2129_p11 = scmp.lt.u32.totalorder %s2125_s0, %s3272_s7 }
  0x50   :  { %p2131_p12 = pnand %p2129_p11, %p2126_p10 }
  0x52   :  { %2134 = shalt.err (!%p2131_p12)
}
  0x53   :  { %s2135_s3 = scalar_lea.vmem %s2693_s20, 256  ;;  %p2140_p0 = scmp.lt.s32.totalorder %s2693_s20, %s2693_s20 }
  0x54   :  { %p2136_p13 = scmp.ne.s32.totalorder %s2693_s20, %s2135_s3  ;;  %p2141_p1 = scmp.lt.s32.totalorder %s2135_s3, %s2135_s3 }
  0x56   :  { %p2142_p2 = por %p2141_p1, %p2140_p0 }
  0x58   :  { %p2143_p3 = pnand %p2142_p2, %p2136_p13 }
  0x5a   :  { %2146 = shalt.err (!%p2143_p3)
}
  0x5b   :  { %s2525_s5 = smov 128   ;;  %s2526_s29 = smov 8  }
  0x5c   :  { %116 = dma.hbm_to_vmem [thread:$0]  %s3272_s7, 256, %s2693_s20, [#allocation15], %s2525_s5, %s2525_s5, %s2526_s29  }
  0x5d   :  { %s2527_s21 = smov [#allocation17]   ;;  %s2528_s30 = smov [#allocation20]  }
  0x5e   :  { %s134_s1 = sshll.u32 %s2527_s21, 4  ;;  %s157_s2 = sshll.u32 %s2528_s30, 4  ;;  %s135_s1 = int_to_ptr.vmem [resolvable:$true] %s134_s1  ;;  %s158_s2 = int_to_ptr.vmem [resolvable:$true] %s157_s2 }
  0x5f   :  { %s2147_s22 = scalar_lea.hbm %s3274_s9, 256 }
  0x60   :  { %p2148_p4 = scmp.ne.s32.totalorder %s3274_s9, %s2147_s22  ;;  %p2151_p5 = scmp.lt.u32.totalorder %s2147_s22, %s3274_s9 }
  0x62   :  { %p2153_p6 = pnand %p2151_p5, %p2148_p4 }
  0x64   :  { %2156 = shalt.err (!%p2153_p6)
}
  0x65   :  { %s2157_s7 = scalar_lea.vmem %s135_s1, 256  ;;  %p2162_p8 = scmp.lt.s32.totalorder %s135_s1, %s135_s1 }
  0x66   :  { %p2158_p7 = scmp.ne.s32.totalorder %s135_s1, %s2157_s7  ;;  %p2163_p9 = scmp.lt.s32.totalorder %s2157_s7, %s2157_s7 }
  0x68   :  { %p2164_p10 = por %p2163_p9, %p2162_p8 }
  0x6a   :  { %p2165_p11 = pnand %p2164_p10, %p2158_p7 }
  0x6c   :  { %2168 = shalt.err (!%p2165_p11)
}
  0x6d   :  { %140 = dma.hbm_to_vmem [thread:$0]  %s3274_s9, 256, %s135_s1, [#allocation18], %s2525_s5, %s2525_s5, %s2526_s29  }
  0x6e   :  { %s2169_s30 = scalar_lea.hbm %s3276_s11, 128 }
  0x6f   :  { %p2170_p12 = scmp.ne.s32.totalorder %s3276_s11, %s2169_s30  ;;  %p2173_p13 = scmp.lt.u32.totalorder %s2169_s30, %s3276_s11 }
  0x71   :  { %p2175_p0 = pnand %p2173_p13, %p2170_p12 }
  0x73   :  { %2178 = shalt.err (!%p2175_p0)
}
  0x74   :  { %s2179_s25 = scalar_lea.vmem %s158_s2, 128  ;;  %p2184_p2 = scmp.lt.s32.totalorder %s158_s2, %s158_s2 }
  0x75   :  { %p2180_p1 = scmp.ne.s32.totalorder %s158_s2, %s2179_s25  ;;  %p2185_p3 = scmp.lt.s32.totalorder %s2179_s25, %s2179_s25 }
  0x77   :  { %p2186_p4 = por %p2185_p3, %p2184_p2 }
  0x79   :  { %p2187_p5 = pnand %p2186_p4, %p2180_p1 }
  0x7b   :  { %2190 = shalt.err (!%p2187_p5)
}
  0x7c   :  { %160 = dma.hbm_to_vmem [thread:$0]  %s3276_s11, 128, %s158_s2, [#allocation21]  }
  0x7d   :  { %s2529_s23 = smov [#allocation23]   ;;  %s2530_s7 = smov [#allocation26]  }
  0x7e   :  { %s177_s3 = sshll.u32 %s2529_s23, 4  ;;  %s197_s20 = sshll.u32 %s2530_s7, 4  ;;  %s178_s3 = int_to_ptr.vmem [resolvable:$true] %s177_s3  ;;  %s198_s20 = int_to_ptr.vmem [resolvable:$true] %s197_s20 }
  0x7f   :  { %s2191_s21 = scalar_lea.hbm %s3278_s13, 16 }
  0x80   :  { %p2192_p6 = scmp.ne.s32.totalorder %s3278_s13, %s2191_s21  ;;  %p2195_p7 = scmp.lt.u32.totalorder %s2191_s21, %s3278_s13 }
  0x82   :  { %p2197_p8 = pnand %p2195_p7, %p2192_p6 }
  0x84   :  { %2200 = shalt.err (!%p2197_p8)
}
  0x85   :  { %s2201_s11 = scalar_lea.vmem %s178_s3, 16  ;;  %s2205_s2 = scalar_lea.vmem %s178_s3, 32 }
  0x86   :  { %p2202_p9 = scmp.ne.s32.totalorder %s178_s3, %s2201_s11  ;;  %p2206_p10 = scmp.lt.s32.totalorder %s178_s3, %s178_s3 }
  0x87   :  { %p2207_p11 = scmp.lt.s32.totalorder %s2205_s2, %s2201_s11 }
  0x89   :  { %p2208_p12 = por %p2207_p11, %p2206_p10 }
  0x8b   :  { %p2209_p13 = pnand %p2208_p12, %p2202_p9 }
  0x8d   :  { %2212 = shalt.err (!%p2209_p13)
}
  0x8e   :  { %180 = dma.hbm_to_vmem [thread:$0]  %s3278_s13, 16, %s178_s3, [#allocation24]  }
  0x8f   :  { %s2213_s23 = scalar_lea.hbm %s3280_s15, 128 }
  0x90   :  { %p2214_p0 = scmp.ne.s32.totalorder %s3280_s15, %s2213_s23  ;;  %p2217_p1 = scmp.lt.u32.totalorder %s2213_s23, %s3280_s15 }
  0x92   :  { %p2219_p2 = pnand %p2217_p1, %p2214_p0 }
  0x94   :  { %2222 = shalt.err (!%p2219_p2)
}
  0x95   :  { %s2223_s30 = scalar_lea.vmem %s198_s20, 128  ;;  %p2228_p4 = scmp.lt.s32.totalorder %s198_s20, %s198_s20 }
  0x96   :  { %p2224_p3 = scmp.ne.s32.totalorder %s198_s20, %s2223_s30  ;;  %p2229_p5 = scmp.lt.s32.totalorder %s2223_s30, %s2223_s30 }
  0x98   :  { %p2230_p6 = por %p2229_p5, %p2228_p4 }
  0x9a   :  { %p2231_p7 = pnand %p2230_p6, %p2224_p3 }
  0x9c   :  { %2234 = shalt.err (!%p2231_p7)
}
  0x9d   :  { %200 = dma.hbm_to_vmem [thread:$0]  %s3280_s15, 128, %s198_s20, [#allocation27]  }
  0x9e   :  { %s2531_s28 = smov [#allocation29]   ;;  %s2532_s22 = smov [#allocation2]  }
  0x9f   :  { %s219_s0 = sshll.u32 %s2531_s28, 4  ;;  %s41_s11 = sshll.u32 %s2532_s22, 4  ;;  %s220_s0 = int_to_ptr.vmem [resolvable:$true] %s219_s0  ;;  %s42_s11 = int_to_ptr.vmem [resolvable:$true] %s41_s11 }
  0xa0   :  { %s2235_s25 = scalar_lea.hbm %s3282_s17, 16 }
  0xa1   :  { %p2236_p8 = scmp.ne.s32.totalorder %s3282_s17, %s2235_s25  ;;  %p2239_p9 = scmp.lt.u32.totalorder %s2235_s25, %s3282_s17 }
  0xa3   :  { %p2241_p10 = pnand %p2239_p9, %p2236_p8 }
  0xa5   :  { %2244 = shalt.err (!%p2241_p10)
}
  0xa6   :  { %s2245_s15 = scalar_lea.vmem %s220_s0, 16  ;;  %s2249_s20 = scalar_lea.vmem %s220_s0, 32 }
  0xa7   :  { %p2246_p11 = scmp.ne.s32.totalorder %s220_s0, %s2245_s15  ;;  %p2250_p12 = scmp.lt.s32.totalorder %s220_s0, %s220_s0 }
  0xa8   :  { %p2251_p13 = scmp.lt.s32.totalorder %s2249_s20, %s2245_s15 }
  0xaa   :  { %p2252_p0 = por %p2251_p13, %p2250_p12 }
  0xac   :  { %p2253_p1 = pnand %p2252_p0, %p2246_p11 }
  0xae   :  { %2256 = shalt.err (!%p2253_p1)
}
  0xaf   :  { %222 = dma.hbm_to_vmem [thread:$0]  %s3282_s17, 16, %s220_s0, [#allocation30]  }
  0xb0   :  { %s3295_s13 = sld [smem:[#allocation44_spill]] }
  0xb6   :  { %s2257_s3 = scalar_lea.hbm %s3295_s13, 128 }
  0xb7   :  { %p2258_p2 = scmp.ne.s32.totalorder %s3295_s13, %s2257_s3  ;;  %p2261_p3 = scmp.lt.u32.totalorder %s2257_s3, %s3295_s13 }
  0xb9   :  { %p2263_p4 = pnand %p2261_p3, %p2258_p2 }
  0xbb   :  { %2266 = shalt.err (!%p2263_p4)
}
  0xbc   :  { %s2267_s25 = scalar_lea.vmem %s42_s11, 128  ;;  %p2272_p6 = scmp.lt.s32.totalorder %s42_s11, %s42_s11 }
  0xbd   :  { %p2268_p5 = scmp.ne.s32.totalorder %s42_s11, %s2267_s25  ;;  %p2273_p7 = scmp.lt.s32.totalorder %s2267_s25, %s2267_s25 }
  0xbf   :  { %p2274_p8 = por %p2273_p7, %p2272_p6 }
  0xc1   :  { %p2275_p9 = pnand %p2274_p8, %p2268_p5 }
  0xc3   :  { %2278 = shalt.err (!%p2275_p9)
}
  0xc4   :  { %44 = dma.hbm_to_vmem [thread:$0]  %s3295_s13, 128, %s42_s11, [#allocation3]  }
  0xc5   :  { %s2533_s9 = smov [#allocation7]   ;;  %s2534_s23 = smov [#allocation10]  }
  0xc6   :  { %s61_s1 = sshll.u32 %s2533_s9, 4  ;;  %s81_s7 = sshll.u32 %s2534_s23, 4  ;;  %s62_s1 = int_to_ptr.vmem [resolvable:$true] %s61_s1  ;;  %s82_s7 = int_to_ptr.vmem [resolvable:$true] %s81_s7 }
  0xc7   :  { %s3296_s26 = sld [smem:[#allocation46_spill]] }
  0xcd   :  { %s2279_s27 = scalar_lea.hbm %s3296_s26, 128 }
  0xce   :  { %p2280_p10 = scmp.ne.s32.totalorder %s3296_s26, %s2279_s27  ;;  %p2283_p11 = scmp.lt.u32.totalorder %s2279_s27, %s3296_s26 }
  0xd0   :  { %p2285_p12 = pnand %p2283_p11, %p2280_p10 }
  0xd2   :  { %2288 = shalt.err (!%p2285_p12)
}
  0xd3   :  { %s2289_s11 = scalar_lea.vmem %s62_s1, 128  ;;  %p2294_p0 = scmp.lt.s32.totalorder %s62_s1, %s62_s1 }
  0xd4   :  { %p2290_p13 = scmp.ne.s32.totalorder %s62_s1, %s2289_s11  ;;  %p2295_p1 = scmp.lt.s32.totalorder %s2289_s11, %s2289_s11 }
  0xd6   :  { %p2296_p2 = por %p2295_p1, %p2294_p0 }
  0xd8   :  { %p2297_p3 = pnand %p2296_p2, %p2290_p13 }
  0xda   :  { %2300 = shalt.err (!%p2297_p3)
}
  0xdb   :  { %64 = dma.hbm_to_vmem [thread:$0]  %s3296_s26, 128, %s62_s1, [#allocation6]  }
  0xdc   :  { %s2301_s25 = scalar_lea.hbm %s3269_s4, 16 }
  0xdd   :  { %p2302_p4 = scmp.ne.s32.totalorder %s3269_s4, %s2301_s25  ;;  %p2305_p5 = scmp.lt.u32.totalorder %s2301_s25, %s3269_s4 }
  0xdf   :  { %p2307_p6 = pnand %p2305_p5, %p2302_p4 }
  0xe1   :  { %2310 = shalt.err (!%p2307_p6)
}
  0xe2   :  { %s2311_s15 = scalar_lea.vmem %s82_s7, 16  ;;  %s2315_s20 = scalar_lea.vmem %s82_s7, 32 }
  0xe3   :  { %p2312_p7 = scmp.ne.s32.totalorder %s82_s7, %s2311_s15  ;;  %p2316_p8 = scmp.lt.s32.totalorder %s82_s7, %s82_s7 }
  0xe4   :  { %p2317_p9 = scmp.lt.s32.totalorder %s2315_s20, %s2311_s15 }
  0xe6   :  { %p2318_p10 = por %p2317_p9, %p2316_p8 }
  0xe8   :  { %p2319_p11 = pnand %p2318_p10, %p2312_p7 }
  0xea   :  { %2322 = shalt.err (!%p2319_p11)
}
  0xeb   :  { %84 = dma.hbm_to_vmem [thread:$0]  %s3269_s4, 16, %s82_s7, [#allocation9]  }
  0xec   :  { %s2535_s27 = smov [#allocation13]   ;;  %s2536_s30 = smov [#allocation16]  }
  0xed   :  { %s101_s21 = sshll.u32 %s2535_s27, 4  ;;  %s122_s3 = sshll.u32 %s2536_s30, 4  ;;  %s102_s21 = int_to_ptr.vmem [resolvable:$true] %s101_s21  ;;  %s2826_s3 = int_to_ptr.vmem [resolvable:$true] %s122_s3 }
  0xee   :  { %s2323_s13 = scalar_lea.hbm %s3271_s6, 128 }
  0xef   :  { %p2324_p12 = scmp.ne.s32.totalorder %s3271_s6, %s2323_s13  ;;  %p2327_p13 = scmp.lt.u32.totalorder %s2323_s13, %s3271_s6 }
  0xf1   :  { %p2329_p0 = pnand %p2327_p13, %p2324_p12 }
  0xf3   :  { %2332 = shalt.err (!%p2329_p0)
}
  0xf4   :  { %s2333_s4 = scalar_lea.vmem %s102_s21, 128  ;;  %p2338_p2 = scmp.lt.s32.totalorder %s102_s21, %s102_s21 }
  0xf5   :  { %p2334_p1 = scmp.ne.s32.totalorder %s102_s21, %s2333_s4  ;;  %p2339_p3 = scmp.lt.s32.totalorder %s2333_s4, %s2333_s4 }
  0xf7   :  { %p2340_p4 = por %p2339_p3, %p2338_p2 }
  0xf9   :  { %p2341_p5 = pnand %p2340_p4, %p2334_p1 }
  0xfb   :  { %2344 = shalt.err (!%p2341_p5)
}
  0xfc   :  { %104 = dma.hbm_to_vmem [thread:$0]  %s3271_s6, 128, %s102_s21, [#allocation12]  }
  0xfd   :  { %s2345_s23 = scalar_lea.hbm %s3273_s8, 256 }
  0xfe   :  { %p2346_p6 = scmp.ne.s32.totalorder %s3273_s8, %s2345_s23  ;;  %p2349_p7 = scmp.lt.u32.totalorder %s2345_s23, %s3273_s8 }
 0x100   :  { %p2351_p8 = pnand %p2349_p7, %p2346_p6 }
 0x102   :  { %2354 = shalt.err (!%p2351_p8)
}
 0x103   :  { %s2355_s27 = scalar_lea.vmem %s2826_s3, 256  ;;  %p2360_p10 = scmp.lt.s32.totalorder %s2826_s3, %s2826_s3 }
 0x104   :  { %p2356_p9 = scmp.ne.s32.totalorder %s2826_s3, %s2355_s27  ;;  %p2361_p11 = scmp.lt.s32.totalorder %s2355_s27, %s2355_s27 }
 0x106   :  { %p2362_p12 = por %p2361_p11, %p2360_p10 }
 0x108   :  { %p2363_p13 = pnand %p2362_p12, %p2356_p9 }
 0x10a   :  { %2366 = shalt.err (!%p2363_p13)
}
 0x10b   :  { %128 = dma.hbm_to_vmem [thread:$0]  %s3273_s8, 256, %s2826_s3, [#allocation15], %s2525_s5, %s2525_s5, %s2526_s29  }
 0x10c   :  { %s2537_s30 = smov [#allocation19]   ;;  %s2538_s11 = smov [#allocation22]  }
 0x10d   :  { %s147_s28 = sshll.u32 %s2537_s30, 4  ;;  %s167_s13 = sshll.u32 %s2538_s11, 4  ;;  %s148_s28 = int_to_ptr.vmem [resolvable:$true] %s147_s28  ;;  %s168_s13 = int_to_ptr.vmem [resolvable:$true] %s167_s13 }
 0x10e   :  { %s2367_s24 = scalar_lea.hbm %s3275_s10, 128 }
 0x10f   :  { %p2368_p0 = scmp.ne.s32.totalorder %s3275_s10, %s2367_s24  ;;  %p2371_p1 = scmp.lt.u32.totalorder %s2367_s24, %s3275_s10 }
 0x111   :  { %p2373_p2 = pnand %p2371_p1, %p2368_p0 }
 0x113   :  { %2376 = shalt.err (!%p2373_p2)
}
 0x114   :  { %s2377_s8 = scalar_lea.vmem %s148_s28, 128  ;;  %p2382_p4 = scmp.lt.s32.totalorder %s148_s28, %s148_s28 }
 0x115   :  { %p2378_p3 = scmp.ne.s32.totalorder %s148_s28, %s2377_s8  ;;  %p2383_p5 = scmp.lt.s32.totalorder %s2377_s8, %s2377_s8 }
 0x117   :  { %p2384_p6 = por %p2383_p5, %p2382_p4 }
 0x119   :  { %p2385_p7 = pnand %p2384_p6, %p2378_p3 }
 0x11b   :  { %2388 = shalt.err (!%p2385_p7)
}
 0x11c   :  { %150 = dma.hbm_to_vmem [thread:$0]  %s3275_s10, 128, %s148_s28, [#allocation18]  }
 0x11d   :  { %s2389_s15 = scalar_lea.hbm %s3277_s12, 16 }
 0x11e   :  { %p2390_p8 = scmp.ne.s32.totalorder %s3277_s12, %s2389_s15  ;;  %p2393_p9 = scmp.lt.u32.totalorder %s2389_s15, %s3277_s12 }
 0x120   :  { %p2395_p10 = pnand %p2393_p9, %p2390_p8 }
 0x122   :  { %2398 = shalt.err (!%p2395_p10)
}
 0x123   :  { %s2399_s6 = scalar_lea.vmem %s168_s13, 16  ;;  %s2403_s21 = scalar_lea.vmem %s168_s13, 32 }
 0x124   :  { %p2400_p11 = scmp.ne.s32.totalorder %s168_s13, %s2399_s6  ;;  %p2404_p12 = scmp.lt.s32.totalorder %s168_s13, %s168_s13 }
 0x125   :  { %p2405_p13 = scmp.lt.s32.totalorder %s2403_s21, %s2399_s6 }
 0x127   :  { %p2406_p0 = por %p2405_p13, %p2404_p12 }
 0x129   :  { %p2407_p1 = pnand %p2406_p0, %p2400_p11 }
 0x12b   :  { %2410 = shalt.err (!%p2407_p1)
}
 0x12c   :  { %170 = dma.hbm_to_vmem [thread:$0]  %s3277_s12, 16, %s168_s13, [#allocation21]  }
 0x12d   :  { %s2539_s28 = smov [#allocation25]   ;;  %s2540_s22 = smov [#allocation28]  }
 0x12e   :  { %s187_s11 = sshll.u32 %s2539_s28, 4  ;;  %s206_s2 = sshll.u32 %s2540_s22, 4  ;;  %s188_s11 = int_to_ptr.vmem [resolvable:$true] %s187_s11  ;;  %s2884_s2 = int_to_ptr.vmem [resolvable:$true] %s206_s2 }
 0x12f   :  { %s2411_s4 = scalar_lea.hbm %s3279_s14, 128 }
 0x130   :  { %p2412_p2 = scmp.ne.s32.totalorder %s3279_s14, %s2411_s4  ;;  %p2415_p3 = scmp.lt.u32.totalorder %s2411_s4, %s3279_s14 }
 0x132   :  { %p2417_p4 = pnand %p2415_p3, %p2412_p2 }
 0x134   :  { %2420 = shalt.err (!%p2417_p4)
}
 0x135   :  { %s2421_s12 = scalar_lea.vmem %s188_s11, 128  ;;  %p2426_p6 = scmp.lt.s32.totalorder %s188_s11, %s188_s11 }
 0x136   :  { %p2422_p5 = scmp.ne.s32.totalorder %s188_s11, %s2421_s12  ;;  %p2427_p7 = scmp.lt.s32.totalorder %s2421_s12, %s2421_s12 }
 0x138   :  { %p2428_p8 = por %p2427_p7, %p2426_p6 }
 0x13a   :  { %p2429_p9 = pnand %p2428_p8, %p2422_p5 }
 0x13c   :  { %2432 = shalt.err (!%p2429_p9)
}
 0x13d   :  { %190 = dma.hbm_to_vmem [thread:$0]  %s3279_s14, 128, %s188_s11, [#allocation24]  }
 0x13e   :  { %s2433_s15 = scalar_lea.hbm %s3281_s16, 512 }
 0x13f   :  { %p2434_p10 = scmp.ne.s32.totalorder %s3281_s16, %s2433_s15  ;;  %p2437_p11 = scmp.lt.u32.totalorder %s2433_s15, %s3281_s16 }
 0x141   :  { %p2439_p12 = pnand %p2437_p11, %p2434_p10 }
 0x143   :  { %2442 = shalt.err (!%p2439_p12)
}
 0x144   :  { %s2443_s6 = scalar_lea.vmem %s2884_s2, 512  ;;  %p2448_p0 = scmp.lt.s32.totalorder %s2884_s2, %s2884_s2 }
 0x145   :  { %p2444_p13 = scmp.ne.s32.totalorder %s2884_s2, %s2443_s6  ;;  %p2449_p1 = scmp.lt.s32.totalorder %s2443_s6, %s2443_s6 }
 0x147   :  { %p2450_p2 = por %p2449_p1, %p2448_p0 }
 0x149   :  { %p2451_p3 = pnand %p2450_p2, %p2444_p13 }
 0x14b   :  { %2454 = shalt.err (!%p2451_p3)
}
 0x14c   :  { %212 = dma.hbm_to_vmem [thread:$0]  %s3281_s16, 512, %s2884_s2, [#allocation27], %s2525_s5, %s2525_s5, %s2526_s29  }
 0x14d   :  { %s2541_s10 = smov [#allocation31]   ;;  %s2455_s22 = scalar_lea.hbm %s3283_s18, 16 }
 0x14e   :  { %s229_s30 = sshll.u32 %s2541_s10, 4  ;;  %p2456_p4 = scmp.ne.s32.totalorder %s3283_s18, %s2455_s22  ;;  %s230_s30 = int_to_ptr.vmem [resolvable:$true] %s229_s30 }
 0x14f   :  { %p2459_p5 = scmp.lt.u32.totalorder %s2455_s22, %s3283_s18 }
 0x151   :  { %p2461_p6 = pnand %p2459_p5, %p2456_p4 }
 0x153   :  { %2464 = shalt.err (!%p2461_p6)
}
 0x154   :  { %s2465_s17 = scalar_lea.vmem %s230_s30, 16  ;;  %s2469_s16 = scalar_lea.vmem %s230_s30, 32 }
 0x155   :  { %p2466_p7 = scmp.ne.s32.totalorder %s230_s30, %s2465_s17  ;;  %p2470_p8 = scmp.lt.s32.totalorder %s230_s30, %s230_s30 }
 0x156   :  { %p2471_p9 = scmp.lt.s32.totalorder %s2469_s16, %s2465_s17 }
 0x158   :  { %p2472_p10 = por %p2471_p9, %p2470_p8 }
 0x15a   :  { %p2473_p11 = pnand %p2472_p10, %p2466_p7 }
 0x15c   :  { %2476 = shalt.err (!%p2473_p11)
}
 0x15d   :  { %232 = dma.hbm_to_vmem [thread:$0]  %s3283_s18, 16, %s230_s30, [#allocation30]  }
 0x15e   :  { %2499 = dma.done.wait [#allocation3], 128  }
 0x15f   :  { %2500 = vsyncadd [#allocation3], 4294967168 }
 0x160   :  { %2501 = dma.done.wait [#allocation6], 256  }
 0x161   :  { %2502 = vsyncadd [#allocation6], 4294967040 }
 0x162   :  { %2503 = dma.done.wait [#allocation9], 32  }
 0x163   :  { %2504 = vsyncadd [#allocation9], 4294967264 }
 0x164   :  { %2505 = dma.done.wait [#allocation12], 256  }
 0x165   :  { %2506 = vsyncadd [#allocation12], 4294967040 }
 0x166   :  { %2507 = dma.done.wait [#allocation15], 512  }
 0x167   :  { %2508 = vsyncadd [#allocation15], 4294966784 }
 0x168   :  { %2509 = dma.done.wait [#allocation18], 384  }
 0x169   :  { %2510 = vsyncadd [#allocation18], 4294966912 }
 0x16a   :  { %2511 = dma.done.wait [#allocation21], 144  }
 0x16b   :  { %2512 = vsyncadd [#allocation21], 4294967152 }
 0x16c   :  { %2513 = dma.done.wait [#allocation24], 144  }
 0x16d   :  { %2514 = vsyncadd [#allocation24], 4294967152 }
 0x16e   :  { %2515 = dma.done.wait [#allocation27], 640  }
 0x16f   :  { %2516 = vsyncadd [#allocation27], 4294966656 }
 0x170   :  { %2517 = dma.done.wait [#allocation30], 32  }
 0x171   :  { %2518 = vsyncadd [#allocation30], 4294967264  ;;  %v290_v0 = vld [vmem:[#allocation2] sm:$0xff]  ;;  %s2542_s18 = smov 100   ;;  %s2543_s2 = smov 4   ;;  %vm297_vm0 = vcmask 31744  }
 0x172   :  { %326 = vrot.lane.b32.xlu0 %v290_v0, %s2542_s18  ;;  %vm299_vm1 = vcmask 293888   ;;  %s2544_s8 = smov 125   ;;  %s2545_s3 = smov 127   ;;  %v2552_v7 = vmov 0.0|0.0   ;;  %vm2554_vm2 = vmmov 0   ;;  %v2555_v18 = vmov 0.0  }
 0x173   :  { %s2546_s12 = smov 123   ;;  %s2547_s13 = smov 126   ;;  %1829 = vmatprep.subr.bf16.mxu0 %v2552_v7  ;;  %1841 = vmatprep.subr.bf16.mxu1 %v2552_v7  ;;  %v2556_v20 = vmov 0   ;;  %v292_v22 = vld [vmem:[#allocation7] sm:$0xff]  ;;  %vm375_vm3 = vcmask 261120   ;;  %v291_v56 = vld [vmem:[#allocation5] sm:$0xff] }
 0x174   :  { %s2548_s0 = smov 121   ;;  %s2549_s9 = smov 124   ;;  %1752 = vmatprep.mubr.msk.f32.mxu0 %vm2554_vm2, %v2555_v18  ;;  %1773 = vmatprep.mubr.msk.f32.mxu1 %vm2554_vm2, %v2555_v18  ;;  %vm390_vm4 = vcmask 588800   ;;  %vm806_vm6 = vcmask 130048  }
 0x175   :  { %s2550_s23 = smov 122   ;;  %s2551_s15 = smov 120   ;;  %1961 = vset.pattern.permute.xlu1 %v2556_v20 }
 0x176   :  { %294 = vrot.lane.b32.xlu0 %v290_v0, %s2543_s2  ;;  %s2553_s20 = smov 32   ;;  %s2557_s1 = smov 96  }
 0x177   :  { %s2558_s26 = smov 111   ;;  %s2559_s27 = smov 1  }
 0x178   :  { %s2568_s6 = smov [#allocation32]  }
 0x179   :  { %s1648_s14 = sshll.u32 %s2568_s6, 4  ;;  %s1649_s14 = int_to_ptr.vmem [resolvable:$true] %s1648_s14 }
 0x17a   :  { %s2477_s21 = scalar_lea.vmem %s1649_s14, 128  ;;  %p2482_p13 = scmp.lt.s32.totalorder %s1649_s14, %s1649_s14 }
 0x17b   :  { %p2478_p12 = scmp.ne.s32.totalorder %s1649_s14, %s2477_s21  ;;  %p2483_p0 = scmp.lt.s32.totalorder %s2477_s21, %s2477_s21 }
 0x17d   :  { %p2484_p1 = por %p2483_p0, %p2482_p13 }
 0x17f   :  { %p2485_p2 = pnand %p2484_p1, %p2478_p12 }
 0x1e4   :  { %v327_v1 = vpop.permute.xlu0 %326 }
 0x1e5   :  { %v329_v2 = vsel %vm297_vm0, 0.0, %v327_v1 }
 0x1e6   :  { %v330_v3 = vsel %vm299_vm1, %v329_v2, 0.0 }
 0x1e7   :  { %336 = vrot.lane.b32.xlu0 %v330_v3, %s2544_s8  ;;  %332 = vrot.lane.b32.xlu1 %v330_v3, %s2545_s3 }
 0x1e8   :  { %v295_v4 = vpop.permute.xlu0 %294 }
 0x1e9   :  { %v298_v5 = vsel %vm297_vm0, 0.0, %v295_v4 }
 0x1ea   :  { %v300_v6 = vsel %vm299_vm1, %v298_v5, 0.0 }
 0x1eb   :  { %340 = vrot.lane.b32.xlu0 %v330_v3, %s2546_s12  ;;  %334 = vrot.lane.b32.xlu1 %v330_v3, %s2547_s13 }
 0x1ef   :  { %344 = vrot.lane.b32.xlu0 %v330_v3, %s2548_s0  ;;  %338 = vrot.lane.b32.xlu1 %v330_v3, %s2549_s9 }
 0x1f3   :  { %342 = vrot.lane.b32.xlu1 %v330_v3, %s2550_s23  ;;  %302 = vrot.lane.b32.xlu0 %v300_v6, %s2545_s3 }
 0x1f7   :  { %346 = vrot.lane.b32.xlu1 %v330_v3, %s2551_s15  ;;  %305 = vrot.lane.b32.xlu0 %v300_v6, %s2547_s13 }
 0x1fb   :  { %308 = vrot.lane.b32.xlu1 %v300_v6, %s2544_s8  ;;  %314 = vrot.lane.b32.xlu0 %v300_v6, %s2546_s12 }
 0x259   :  { %v333_v8 = vpop.permute.xlu1 %332  ;;  %v337_v9 = vpop.permute.xlu0 %336 }
 0x25a   :  { %v1941_v10 = vpack.i.bf16 %v333_v8, %v330_v3 }
 0x25c   :  { %1942 = vrot.lane.b32.xlu1 %v1941_v10, %s2553_s20 }
 0x25d   :  { %v335_v11 = vpop.permute.xlu1 %334  ;;  %v341_v13 = vpop.permute.xlu0 %340 }
 0x25e   :  { %v1946_v12 = vpack.i.bf16 %v337_v9, %v335_v11  ;;  %v1668_v11 = vld [vmem:[#allocation10] ss:$0 sm:$0xff] }
 0x260   :  { %311 = vrot.lane.b32.xlu1 %v300_v6, %s2549_s9  ;;  %1947 = vrot.lane.b32.xlu0 %v1946_v12, %s2553_s20 }
 0x261   :  { %v339_v14 = vpop.permute.xlu1 %338  ;;  %v345_v16 = vpop.permute.xlu0 %344 }
 0x262   :  { %v1951_v15 = vpack.i.bf16 %v341_v13, %v339_v14  ;;  %v1667_v14 = vld [vmem:[#allocation8] ss:$0 sm:$0xff] }
 0x264   :  { %317 = vrot.lane.b32.xlu0 %v300_v6, %s2550_s23  ;;  %1952 = vrot.lane.b32.xlu1 %v1951_v15, %s2553_s20 }
 0x265   :  { %v343_v17 = vpop.permute.xlu1 %342  ;;  %v303_v23 = vpop.permute.xlu0 %302 }
 0x266   :  { %v1956_v19 = vpack.i.bf16 %v345_v16, %v343_v17 }
 0x268   :  { %320 = vrot.lane.b32.xlu1 %v300_v6, %s2548_s0  ;;  %1957 = vrot.lane.b32.xlu0 %v1956_v19, %s2553_s20 }
 0x269   :  { %v347_v21 = vpop.permute.xlu1 %346  ;;  %v306_v24 = vpop.permute.xlu0 %305 }
 0x26c   :  { %323 = vrot.lane.b32.xlu1 %v300_v6, %s2551_s15  ;;  %364 = vrot.lane.b32.xlu0 %v347_v21, %s2553_s20 }
 0x26d   :  { %v309_v25 = vpop.permute.xlu1 %308  ;;  %v315_v26 = vpop.permute.xlu0 %314 }
 0x270   :  { %387 = vperm.xlu1 %1961, %v292_v22  }
 0x2ce   :  { %v1943_v27 = vpop.permute.xlu1 %1942 }
 0x2cf   :  { %v1945_v28 = vunpack.i.h.bf16 %v1943_v27  ;;  %v1944_v29 = vunpack.i.l.bf16 %v1943_v27 }
 0x2d1   :  { %v376_v30 = vsel %vm375_vm3, %v300_v6, %v1944_v29  ;;  %v377_v31 = vsel %vm375_vm3, %v303_v23, %v1945_v28 }
 0x2d2   :  { %v312_v32 = vpop.permute.xlu1 %311  ;;  %v1948_v33 = vpop.permute.xlu0 %1947  ;;  %v1830_v34 = vpack.c.bf16 %v377_v31, %v376_v30 }
 0x2d3   :  { %v1950_v35 = vunpack.i.h.bf16 %v1948_v33  ;;  %v1949_v36 = vunpack.i.l.bf16 %v1948_v33 }
 0x2d4   :  { %1831 = vmatpush3.bf16.msra.mxu0 %v1830_v34 }
 0x2d5   :  { %1832 = vmatprep.subr.bf16.mxu0 %v2552_v7  ;;  %v378_v37 = vsel %vm375_vm3, %v306_v24, %v1949_v36  ;;  %v379_v38 = vsel %vm375_vm3, %v309_v25, %v1950_v35 }
 0x2d6   :  { %v1953_v39 = vpop.permute.xlu1 %1952  ;;  %v318_v40 = vpop.permute.xlu0 %317  ;;  %v1833_v41 = vpack.c.bf16 %v379_v38, %v378_v37 }
 0x2d7   :  { %v1955_v42 = vunpack.i.h.bf16 %v1953_v39  ;;  %v1954_v43 = vunpack.i.l.bf16 %v1953_v39 }
 0x2d8   :  { %1834 = vmatpush3.bf16.msra.mxu0 %v1833_v41 }
 0x2d9   :  { %1835 = vmatprep.subr.bf16.mxu0 %v2552_v7  ;;  %v380_v44 = vsel %vm375_vm3, %v312_v32, %v1954_v43  ;;  %v381_v45 = vsel %vm375_vm3, %v315_v26, %v1955_v42 }
 0x2da   :  { %v321_v46 = vpop.permute.xlu1 %320  ;;  %v1958_v47 = vpop.permute.xlu0 %1957  ;;  %v1836_v48 = vpack.c.bf16 %v381_v45, %v380_v44 }
 0x2db   :  { %v1960_v49 = vunpack.i.h.bf16 %v1958_v47  ;;  %v1959_v50 = vunpack.i.l.bf16 %v1958_v47 }
 0x2dc   :  { %1837 = vmatpush3.bf16.msra.mxu0 %v1836_v48 }
 0x2dd   :  { %1838 = vmatprep.subr.bf16.mxu0 %v2552_v7  ;;  %v382_v51 = vsel %vm375_vm3, %v318_v40, %v1959_v50  ;;  %v383_v52 = vsel %vm375_vm3, %v321_v46, %v1960_v49 }
 0x2de   :  { %v1839_v53 = vpack.c.bf16 %v383_v52, %v382_v51  ;;  %v324_v54 = vpop.permute.xlu1 %323  ;;  %v365_v55 = vpop.permute.xlu0 %364 }
 0x2df   :  { %v384_v57 = vsel %vm375_vm3, %v324_v54, %v365_v55 }
 0x2e0   :  { %1840 = vmatpush3.bf16.msra.mxu0 %v1839_v53 }
 0x2e1   :  { %1750 = vmatprep.subr.mxu0 %v2555_v18 }
 0x2e4   :  { %1751 = vmatpush3.msra.mxu0 %v384_v57  ;;  %v531_v57 = vld [vmem:[#allocation13] sm:$0xff] }
 0x2e5   :  { %1753 = vmatmul.mubr.msk.f32.vlgmr.msra.gmra.mrb[0].mxu0 %vm390_vm4, %v291_v56 }
 0x2ef   :  { %v388_v58 = vpop.permute.xlu1 %387 }
 0x3b8   :  { %v460_v59 = vpop.f32.mrb[0].mxu0 }
 0x3b9   :  { %v461_v60 = vadd.f32 %v460_v59, %v388_v58  ;;  %v1754_v61 = vpop.f32.mrb[1].mxu0 }
 0x3bb   :  { %495 = vrot.lane.b32.xlu0 %v461_v60, %s2557_s1  ;;  %v466_v62 = vsel %vm375_vm3, %v461_v60, 0.0 }
 0x3da   :  { %467 = vadd.xlane.f32.xlu0 %v466_v62 }
 0x42d   :  { %v496_v63 = vpop.permute.xlu0 %495 }
 0x42e   :  { %v498_v0 = vsel %vm375_vm3, %v496_v63, 0.0 }
 0x42f   :  { %499 = vadd.xlane.f32.xlu1 %v498_v0 }
 0x467   :  { %v468_v1 = vpop.xlane.xlu0 %467 }
 0x468   :  { %v470_v2 = vmul.f32 0.03125, %v468_v1 }
 0x46a   :  { %v471_v3 = vsub.f32 %v461_v60, %v470_v2 }
 0x46c   :  { %v472_v4 = vmul.f32 %v471_v3, %v471_v3 }
 0x46e   :  { %v473_v5 = vsel %vm375_vm3, %v472_v4, 0.0 }
 0x46f   :  { %474 = vadd.xlane.f32.xlu1 %v473_v5 }
 0x4bc   :  { %v500_v6 = vpop.xlane.xlu1 %499 }
 0x4bd   :  { %v501_v8 = vmul.f32 0.03125, %v500_v6 }
 0x4bf   :  { %v502_v9 = vsub.f32 %v461_v60, %v501_v8 }
 0x4c1   :  { %v503_v10 = vmul.f32 %v502_v9, %v502_v9 }
 0x4c3   :  { %505 = vrot.lane.b32.xlu0 %v503_v10, %s2557_s1 }
 0x4c7   :  { %519 = vrot.lane.b32.xlu0 %v1668_v11, %s2553_s20 }
 0x4fc   :  { %v475_v15 = vpop.xlane.xlu1 %474 }
 0x4fd   :  { %v476_v16 = vmul.f32 0.03125, %v475_v15 }
 0x4ff   :  { %v477_v17 = vadd.f32 1e-05, %v476_v16 }
 0x501   :  { %2026 = vrsqrt.f32 %v477_v17 }
 0x50b   :  { %v2027_v23 = vpop.eup %2026 }
 0x50c   :  { %v479_v24 = vmul.f32 %v2027_v23, %v471_v3 }
 0x50e   :  { %v486_v27 = vmul.f32 %v1667_v14, %v479_v24 }
 0x510   :  { %v493_v31 = vadd.f32 %v1668_v11, %v486_v27 }
 0x535   :  { %v506_v12 = vpop.permute.xlu0 %505 }
 0x536   :  { %v508_v13 = vsel %vm375_vm3, %v506_v12, 0.0 }
 0x537   :  { %509 = vadd.xlane.f32.xlu1 %v508_v13 }
 0x539   :  { %v520_v29 = vpop.permute.xlu0 %519 }
 0x548   :  { %515 = vrot.lane.b32.xlu1 %v1667_v14, %s2553_s20 }
 0x5c4   :  { %v510_v19 = vpop.xlane.xlu1 %509 }
 0x5c5   :  { %v511_v21 = vmul.f32 0.03125, %v510_v19 }
 0x5c7   :  { %v512_v22 = vadd.f32 1e-05, %v511_v21 }
 0x5c8   :  { %v516_v26 = vpop.permute.xlu1 %515 }
 0x5c9   :  { %2028 = vrsqrt.f32 %v512_v22 }
 0x5d3   :  { %v2029_v25 = vpop.eup %2028 }
 0x5d4   :  { %v514_v28 = vmul.f32 %v2029_v25, %v502_v9 }
 0x5d6   :  { %v518_v30 = vmul.f32 %v516_v26, %v514_v28 }
 0x5d8   :  { %v522_v32 = vadd.f32 %v520_v29, %v518_v30  ;;  %v530_v30 = vld [vmem:[#allocation11] sm:$0xff] }
 0x5da   :  { %v523_v33 = vsel %vm375_vm3, %v493_v31, %v522_v32  ;;  %v703_v32 = vld [vmem:[#allocation28] sm:$0xff] }
 0x5db   :  { %v525_v34 = vmin.f32 %v523_v33, 0.0  ;;  %vm524_vm5 = vcmp.gt.f32.partialorder %v523_v33, 0.0 }
 0x5dd   :  { %v526_v35 = vmul.f32 1.442695, %v525_v34  ;;  %v705_v34 = vld [vmem:[#allocation28 + $0x10] sm:$0xff] }
 0x5df   :  { %2030 = vpow2.f32 %v526_v35 }
 0x5e9   :  { %v2031_v36 = vpop.eup %2030 }
 0x5ea   :  { %v1669_v37 = vadd.f32 -1.0, %v2031_v36  ;;  %v706_v36 = vld [vmem:[#allocation28 + $0x18] sm:$0xff] }
 0x5ec   :  { %v529_v38 = vsel %vm524_vm5, %v523_v33, %v1669_v37  ;;  %v704_v33 = vld [vmem:[#allocation28 + $0x8] sm:$0xff]  ;;  %v1857_v37 = vpack.c.bf16 %v706_v36, %v705_v34  ;;  %v1673_v36 = vld [vmem:[#allocation29] ss:$0 sm:$0xff] }
 0x5ed   :  { %533 = vrot.lane.b32.xlu1 %v529_v38, %s2543_s2  ;;  %563 = vrot.lane.b32.xlu0 %v529_v38, %s2542_s18  ;;  %v1853_v35 = vpack.c.bf16 %v704_v33, %v703_v32 }
 0x5ef   :  { %1854 = vmatprep.subr.bf16.mxu0 %v1853_v35 }
 0x5f0   :  { %1856 = vmatpush3.bf16.msra.mxu0 %v1853_v35 }
 0x5f1   :  { %1858 = vmatprep.subr.bf16.mxu0 %v1857_v37 }
 0x5f4   :  { %1860 = vmatpush3.bf16.msra.mxu0 %v1857_v37 }
 0x5f5   :  { %1873 = vmatprep.subr.bf16.mxu0 %v2552_v7 }
 0x65f   :  { %v564_v39 = vpop.permute.xlu0 %563  ;;  %v534_v42 = vpop.permute.xlu1 %533 }
 0x660   :  { %v566_v40 = vsel %vm297_vm0, 0.0, %v564_v39  ;;  %v536_v43 = vsel %vm297_vm0, 0.0, %v534_v42  ;;  %v855_v42 = vld [vmem:[#allocation14 + $0x8] sm:$0xff] }
 0x661   :  { %v567_v41 = vsel %vm299_vm1, %v566_v40, 0.0  ;;  %v537_v44 = vsel %vm299_vm1, %v536_v43, 0.0 }
 0x662   :  { %571 = vrot.lane.b32.xlu1 %v567_v41, %s2547_s13  ;;  %569 = vrot.lane.b32.xlu0 %v567_v41, %s2545_s3 }
 0x666   :  { %575 = vrot.lane.b32.xlu1 %v567_v41, %s2549_s9  ;;  %573 = vrot.lane.b32.xlu0 %v567_v41, %s2544_s8 }
 0x66a   :  { %579 = vrot.lane.b32.xlu1 %v567_v41, %s2550_s23  ;;  %577 = vrot.lane.b32.xlu0 %v567_v41, %s2546_s12 }
 0x66e   :  { %583 = vrot.lane.b32.xlu1 %v567_v41, %s2551_s15  ;;  %581 = vrot.lane.b32.xlu0 %v567_v41, %s2548_s0 }
 0x672   :  { %545 = vrot.lane.b32.xlu1 %v537_v44, %s2544_s8  ;;  %539 = vrot.lane.b32.xlu0 %v537_v44, %s2545_s3 }
 0x676   :  { %542 = vrot.lane.b32.xlu0 %v537_v44, %s2547_s13 }
 0x67a   :  { %551 = vrot.lane.b32.xlu0 %v537_v44, %s2546_s12 }
 0x6d4   :  { %v572_v45 = vpop.permute.xlu1 %571  ;;  %v570_v46 = vpop.permute.xlu0 %569 }
 0x6d5   :  { %v1962_v47 = vpack.i.bf16 %v570_v46, %v567_v41 }
 0x6d7   :  { %1963 = vrot.lane.b32.xlu1 %v1962_v47, %s2553_s20 }
 0x6d8   :  { %v574_v48 = vpop.permute.xlu0 %573  ;;  %v576_v50 = vpop.permute.xlu1 %575 }
 0x6d9   :  { %v1967_v49 = vpack.i.bf16 %v574_v48, %v572_v45 }
 0x6db   :  { %548 = vrot.lane.b32.xlu1 %v537_v44, %s2549_s9  ;;  %1968 = vrot.lane.b32.xlu0 %v1967_v49, %s2553_s20 }
 0x6dc   :  { %v578_v51 = vpop.permute.xlu0 %577  ;;  %v580_v53 = vpop.permute.xlu1 %579 }
 0x6dd   :  { %v1972_v52 = vpack.i.bf16 %v578_v51, %v576_v50 }
 0x6df   :  { %554 = vrot.lane.b32.xlu0 %v537_v44, %s2550_s23  ;;  %1973 = vrot.lane.b32.xlu1 %v1972_v52, %s2553_s20 }
 0x6e0   :  { %v582_v54 = vpop.permute.xlu0 %581  ;;  %v584_v56 = vpop.permute.xlu1 %583 }
 0x6e1   :  { %v1977_v55 = vpack.i.bf16 %v582_v54, %v580_v53  ;;  %v854_v53 = vld [vmem:[#allocation14] sm:$0xff] }
 0x6e3   :  { %557 = vrot.lane.b32.xlu1 %v537_v44, %s2548_s0  ;;  %1978 = vrot.lane.b32.xlu0 %v1977_v55, %s2553_s20  ;;  %v868_v55 = vld [vmem:[#allocation16] sm:$0xff] }
 0x6e4   :  { %v540_v58 = vpop.permute.xlu0 %539  ;;  %v546_v60 = vpop.permute.xlu1 %545 }
 0x6e7   :  { %560 = vrot.lane.b32.xlu1 %v537_v44, %s2551_s15  ;;  %601 = vrot.lane.b32.xlu0 %v584_v56, %s2553_s20 }
 0x6e8   :  { %v543_v59 = vpop.permute.xlu0 %542 }
 0x6eb   :  { %623 = vperm.xlu1 %1961, %v531_v57  }
 0x6ec   :  { %v552_v61 = vpop.permute.xlu0 %551 }
 0x749   :  { %v1964_v62 = vpop.permute.xlu1 %1963 }
 0x74a   :  { %v1966_v63 = vunpack.i.h.bf16 %v1964_v62  ;;  %v1965_v0 = vunpack.i.l.bf16 %v1964_v62  ;;  %v2560_v62 = vmov 1  }
 0x74b   :  { %1982 = vset.pattern.permute.xlu1 %v2560_v62  ;;  %1983 = vset.pattern.permute.xlu0 %v2560_v62 }
 0x74c   :  { %v612_v1 = vsel %vm375_vm3, %v537_v44, %v1965_v0  ;;  %v613_v2 = vsel %vm375_vm3, %v540_v58, %v1966_v63  ;;  %v869_v44 = vld [vmem:[#allocation16 + $0x8] sm:$0xff] }
 0x74d   :  { %v549_v3 = vpop.permute.xlu1 %548  ;;  %v1969_v4 = vpop.permute.xlu0 %1968  ;;  %v1842_v5 = vpack.c.bf16 %v613_v2, %v612_v1  ;;  %v3050_v2 = vld [vmem:[#allocation17] sm:$0xff] }
 0x74e   :  { %v1971_v6 = vunpack.i.h.bf16 %v1969_v4  ;;  %v1970_v8 = vunpack.i.l.bf16 %v1969_v4 }
 0x74f   :  { %1843 = vmatpush3.bf16.msra.mxu1 %v1842_v5 }
 0x750   :  { %1844 = vmatprep.subr.bf16.mxu1 %v2552_v7  ;;  %v614_v9 = vsel %vm375_vm3, %v543_v59, %v1970_v8  ;;  %v615_v10 = vsel %vm375_vm3, %v546_v60, %v1971_v6  ;;  %v865_v59 = vld [vmem:[#allocation17 + $0x8] sm:$0xff] }
 0x751   :  { %v1974_v11 = vpop.permute.xlu1 %1973  ;;  %v555_v12 = vpop.permute.xlu0 %554  ;;  %v1845_v13 = vpack.c.bf16 %v615_v10, %v614_v9 }
 0x752   :  { %v1976_v14 = vunpack.i.h.bf16 %v1974_v11  ;;  %v1975_v15 = vunpack.i.l.bf16 %v1974_v11 }
 0x753   :  { %1846 = vmatpush3.bf16.msra.mxu1 %v1845_v13 }
 0x754   :  { %1847 = vmatprep.subr.bf16.mxu1 %v2552_v7  ;;  %v616_v16 = vsel %vm375_vm3, %v549_v3, %v1975_v15  ;;  %v617_v17 = vsel %vm375_vm3, %v552_v61, %v1976_v14 }
 0x755   :  { %v558_v19 = vpop.permute.xlu1 %557  ;;  %v1979_v21 = vpop.permute.xlu0 %1978  ;;  %v1848_v22 = vpack.c.bf16 %v617_v17, %v616_v16 }
 0x756   :  { %v1981_v23 = vunpack.i.h.bf16 %v1979_v21  ;;  %v1980_v24 = vunpack.i.l.bf16 %v1979_v21 }
 0x757   :  { %1849 = vmatpush3.bf16.msra.mxu1 %v1848_v22 }
 0x758   :  { %1850 = vmatprep.subr.bf16.mxu1 %v2552_v7  ;;  %v618_v25 = vsel %vm375_vm3, %v555_v12, %v1980_v24  ;;  %v619_v26 = vsel %vm375_vm3, %v558_v19, %v1981_v23 }
 0x759   :  { %v1851_v27 = vpack.c.bf16 %v619_v26, %v618_v25  ;;  %v561_v28 = vpop.permute.xlu1 %560  ;;  %v602_v29 = vpop.permute.xlu0 %601 }
 0x75a   :  { %v620_v31 = vsel %vm375_vm3, %v561_v28, %v602_v29 }
 0x75b   :  { %1852 = vmatpush3.bf16.msra.mxu1 %v1851_v27 }
 0x75c   :  { %1771 = vmatprep.subr.mxu1 %v2555_v18 }
 0x75f   :  { %1772 = vmatpush3.msra.mxu1 %v620_v31 }
 0x760   :  { %1774 = vmatmul.mubr.msk.f32.vlgmr.msra.gmra.mrb[0].mxu1 %vm390_vm4, %v530_v30  ;;  %1861 = vmatprep.subr.bf16.mxu1 %v2552_v7 }
 0x761   :  { %1805 = vmatprep.mubr.msk.f32.mxu1 %vm2554_vm2, %v2555_v18 }
 0x76a   :  { %v624_v38 = vpop.permute.xlu1 %623 }
 0x833   :  { %v695_v39 = vpop.f32.mrb[0].mxu1 }
 0x834   :  { %v696_v40 = vadd.f32 %v695_v39, %v624_v38  ;;  %v1775_v41 = vpop.f32.mrb[1].mxu1 }
 0x836   :  { %700 = vrot.lane.b32.xlu0 %v696_v40, %s2557_s1  ;;  %1784 = vmatprep.mubr.msk.f32.mxu0 %vm375_vm3, %v696_v40  ;;  %v856_v54 = vmul.f32 %v854_v53, %v696_v40  ;;  %v870_v57 = vmul.f32 %v868_v55, %v696_v40 }
 0x838   :  { %v858_v56 = vsel %vm375_vm3, %v856_v54, 0.0  ;;  %v872_v58 = vsel %vm375_vm3, %v870_v57, 0.0 }
 0x8a8   :  { %v701_v43 = vpop.permute.xlu0 %700 }
 0x8a9   :  { %1785 = vmatmul.mubr.msk.f32.vlgmr.msra.gmra.mrb[2].mxu0 %vm375_vm3, %v701_v43  ;;  %v857_v45 = vmul.f32 %v855_v42, %v701_v43  ;;  %v871_v47 = vmul.f32 %v869_v44, %v701_v43 }
 0x8aa   :  { %1826 = vmatprep.mubr.msk.f32.mxu0 %vm2554_vm2, %v2555_v18 }
 0x8ab   :  { %v861_v46 = vsel %vm375_vm3, %v857_v45, 0.0  ;;  %v875_v48 = vsel %vm375_vm3, %v871_v47, 0.0 }
 0x8ac   :  { %862 = vadd.xlane.f32.xlu1 %v861_v46 }
 0x8b0   :  { %876 = vadd.xlane.f32.xlu1 %v875_v48  ;;  %v2561_v48 = vmov 0.7853982  }
 0x939   :  { %v863_v60 = vpop.xlane.xlu1 %862 }
 0x93a   :  { %v867_v61 = vadd.f32 %v865_v59, %v863_v60 }
 0x93d   :  { %v877_v1 = vpop.xlane.xlu1 %876 }
 0x93e   :  { %v3052_v4 = vadd.f32 %v877_v1, %v865_v59 }
 0x940   :  { %v936_v9 = vand.u32 2147483647, %v3052_v4  ;;  %vm967_vm10 = vcmp.eq.f32.partialorder %v3052_v4, 0.0  ;;  %vm970_vm11 = vcmp.ne.f32.partialorder %v3052_v4, %v3052_v4  ;;  %v980_v54 = vand.u32 2147483648, %v3052_v4 }
 0x942   :  { %vm976_vm15 = vcmp.eq.s32.totalorder %v936_v9, inf }
 0x97c   :  { %v3039_v49 = vpop.f32.mrb[2].mxu0 }
 0x97d   :  { %v787_v50 = vmul.f32 %v3039_v49, %v3039_v49  ;;  %v3043_v51 = vpop.f32.mrb[3].mxu0  ;;  %v853_v57 = vmul.f32 0.03125, %v3039_v49 }
 0x97e   :  { %v786_v52 = vmul.f32 %v3043_v51, %v3043_v51 }
 0x97f   :  { %792 = vrot.lane.b32.xlu0 %v787_v50, %s2558_s26 }
 0x980   :  { %790 = vrot.lane.b32.xlu1 %v786_v52, %s2558_s26 }
 0x99e   :  { %859 = vadd.xlane.f32.xlu0 %v858_v56 }
 0x9a4   :  { %873 = vadd.xlane.f32.xlu1 %v872_v58  ;;  %v852_v58 = vmul.f32 0.03125, %v3043_v51 }
 0x9b4   :  { %884 = vrot.lane.b32.xlu0 %v867_v61, %s2559_s27 }
 0x9f1   :  { %v793_v63 = vpop.permute.xlu0 %792 }
 0x9f2   :  { %v797_v0 = vadd.f32 %v793_v63, %v787_v50  ;;  %v791_v6 = vpop.permute.xlu1 %790 }
 0x9f3   :  { %v796_v10 = vadd.f32 %v791_v6, %v786_v52 }
 0x9f4   :  { %802 = vrot.lane.b32.xlu0 %v797_v0, %s2545_s3 }
 0xa2b   :  { %v860_v3 = vpop.xlane.xlu0 %859 }
 0xa2c   :  { %v866_v5 = vadd.f32 %v3050_v2, %v860_v3 }
 0xa2e   :  { %882 = vrot.lane.b32.xlu0 %v866_v5, %s2559_s27 }
 0xa2f   :  { %v885_v8 = vpop.permute.xlu0 %884 }
 0xa30   :  { %v935_v11 = vand.u32 2147483647, %v885_v8  ;;  %vm965_vm8 = vcmp.lt.s32.totalorder %v885_v8, 0  ;;  %vm969_vm9 = vcmp.ne.f32.partialorder %v885_v8, %v885_v8  ;;  %vm962_vm12 = vcmp.lt.f32.partialorder %v885_v8, 0.0 }
 0xa31   :  { %v966_v45 = vsel %vm965_vm8, 3.1415927, %v2555_v18  ;;  %vm971_vm14 = vmor %vm969_vm9, %vm970_vm11  ;;  %v974_v50 = vsel %vm962_vm12, 2.3561945, %v2561_v48  ;;  %v874_v59 = vpop.xlane.xlu1 %873 }
 0xa32   :  { %v938_v12 = vmax.f32 %v935_v11, %v936_v9  ;;  %800 = vrot.lane.b32.xlu0 %v796_v10, %s2545_s3  ;;  %v937_v13 = vmin.f32 %v935_v11, %v936_v9  ;;  %vm959_vm7 = vcmp.gt.f32.partialorder %v936_v9, %v935_v11  ;;  %vm975_vm13 = vcmp.eq.s32.totalorder %v935_v11, inf }
 0xa33   :  { %vm977_vm2 = vmand %vm975_vm13, %vm976_vm15  ;;  %v878_v60 = vadd.f32 %v874_v59, %v3050_v2 }
 0xa34   :  { %2032 = vrcp.f32 %v938_v12 }
 0xa35   :  { %v889_v62 = vand.u32 2147483647, %v878_v60  ;;  %vm923_vm11 = vcmp.ne.f32.partialorder %v878_v60, %v878_v60 }
 0xa37   :  { %vm929_vm13 = vcmp.eq.s32.totalorder %v889_v62, inf }
 0xa3e   :  { %v2033_v14 = vpop.eup %2032 }
 0xa3f   :  { %v940_v15 = vmul.f32 %v2033_v14, %v937_v13 }
 0xa41   :  { %v941_v16 = vmul.f32 %v940_v15, %v940_v15 }
 0xa43   :  { %v942_v17 = vmul.f32 0.002785687, %v941_v16 }
 0xa45   :  { %v943_v19 = vadd.f32 -0.015866, %v942_v17 }
 0xa47   :  { %v944_v21 = vmul.f32 %v943_v19, %v941_v16 }
 0xa49   :  { %v945_v22 = vadd.f32 0.04247222, %v944_v21 }
 0xa4b   :  { %v946_v23 = vmul.f32 %v945_v22, %v941_v16 }
 0xa4d   :  { %v947_v24 = vadd.f32 -0.074975304, %v946_v23 }
 0xa4f   :  { %v948_v25 = vmul.f32 %v947_v24, %v941_v16 }
 0xa51   :  { %v949_v26 = vadd.f32 0.1064488, %v948_v25 }
 0xa53   :  { %v950_v27 = vmul.f32 %v949_v26, %v941_v16 }
 0xa55   :  { %v951_v28 = vadd.f32 -0.14207031, %v950_v27 }
 0xa57   :  { %v952_v29 = vmul.f32 %v951_v28, %v941_v16 }
 0xa59   :  { %v953_v30 = vadd.f32 0.19993454, %v952_v29 }
 0xa5b   :  { %v954_v31 = vmul.f32 %v953_v30, %v941_v16 }
 0xa5d   :  { %v955_v32 = vadd.f32 -0.33333147, %v954_v31 }
 0xa5f   :  { %v956_v33 = vmul.f32 %v955_v32, %v941_v16 }
 0xa61   :  { %v957_v34 = vmul.f32 %v956_v33, %v940_v15 }
 0xa63   :  { %v958_v35 = vadd.f32 %v957_v34, %v940_v15 }
 0xa65   :  { %v960_v37 = vsub.f32 1.5707964, %v958_v35 }
 0xa66   :  { %v803_v38 = vpop.permute.xlu0 %802 }
 0xa67   :  { %v961_v39 = vsel %vm959_vm7, %v960_v37, %v958_v35  ;;  %v821_v40 = vmul.f32 %v1673_v36, %v803_v38  ;;  %v810_v41 = vsel %vm806_vm6, %v803_v38, 0.0  ;;  %v933_v37 = vand.u32 2147483648, %v878_v60 }
 0xa68   :  { %v963_v42 = vsub.f32 3.1415927, %v961_v39  ;;  %811 = vadd.xlane.f32.xlu0 %v810_v41 }
 0xa69   :  { %v825_v43 = vsel %vm806_vm6, %v821_v40, 0.0 }
 0xa6a   :  { %v964_v44 = vsel %vm962_vm12, %v963_v42, %v961_v39  ;;  %826 = vadd.xlane.f32.xlu1 %v825_v43 }
 0xa6b   :  { %v968_v46 = vsel %vm967_vm10, %v966_v45, %v964_v44  ;;  %vm920_vm10 = vcmp.eq.f32.partialorder %v878_v60, 0.0  ;;  %v3077_v44 = vld [vmem:[#allocation31] ss:$0 sm:$0xff] }
 0xa6c   :  { %v972_v47 = vsel %vm971_vm14, nan, %v968_v46 }
 0xa6d   :  { %v978_v52 = vsel %vm977_vm2, %v974_v50, %v972_v47 }
 0xa6e   :  { %v979_v53 = vand.u32 2147483647, %v978_v52 }
 0xa70   :  { %v981_v55 = vor.u32 %v980_v54, %v979_v53 }
 0xa72   :  { %v984_v56 = vmul.f32 0.31830987, %v981_v55 }
 0xa7b   :  { %1001 = vperm.xlu1 %1982, %v984_v56  }
 0xa7f   :  { %1984 = vset.pattern.permute.xlu1 %v2556_v20 }
 0xa80   :  { %1225 = vperm.xlu1 %1984, %v853_v57  }
 0xa84   :  { %1220 = vperm.xlu1 %1984, %v852_v58  }
 0xaa0   :  { %v883_v61 = vpop.permute.xlu0 %882 }
 0xaa1   :  { %v888_v63 = vand.u32 2147483647, %v883_v61  ;;  %vm922_vm7 = vcmp.ne.f32.partialorder %v883_v61, %v883_v61  ;;  %vm915_vm8 = vcmp.lt.f32.partialorder %v883_v61, 0.0 }
 0xaa2   :  { %vm924_vm12 = vmor %vm922_vm7, %vm923_vm11  ;;  %v927_v34 = vsel %vm915_vm8, 2.3561945, %v2561_v48 }
 0xaa3   :  { %v891_v0 = vmax.f32 %v888_v63, %v889_v62  ;;  %v890_v5 = vmin.f32 %v888_v63, %v889_v62  ;;  %vm912_vm5 = vcmp.gt.f32.partialorder %v889_v62, %v888_v63  ;;  %vm928_vm9 = vcmp.eq.s32.totalorder %v888_v63, inf }
 0xaa4   :  { %v801_v1 = vpop.permute.xlu0 %800  ;;  %vm930_vm14 = vmand %vm928_vm9, %vm929_vm13  ;;  %v2563_v63 = vmov 2475754826  }
 0xaa5   :  { %2034 = vrcp.f32 %v891_v0  ;;  %v820_v3 = vmul.f32 %v1673_v36, %v801_v1  ;;  %v807_v4 = vsel %vm806_vm6, %v801_v1, 0.0 }
 0xaa6   :  { %808 = vadd.xlane.f32.xlu0 %v807_v4 }
 0xaa7   :  { %v822_v49 = vsel %vm806_vm6, %v820_v3, 0.0  ;;  %vm918_vm6 = vcmp.lt.s32.totalorder %v883_v61, 0  ;;  %v2562_v61 = vmov 683565275   ;;  %v2564_v3 = vmov 2131351028  }
 0xaa8   :  { %v919_v31 = vsel %vm918_vm6, 3.1415927, %v2555_v18 }
 0xaaa   :  { %823 = vadd.xlane.f32.xlu0 %v822_v49 }
 0xaaf   :  { %v2035_v6 = vpop.eup %2034 }
 0xab0   :  { %v893_v51 = vmul.f32 %v2035_v6, %v890_v5  ;;  %v2565_v5 = vmov 2102212464  }
 0xab2   :  { %v894_v8 = vmul.f32 %v893_v51, %v893_v51 }
 0xab4   :  { %v895_v9 = vmul.f32 0.002785687, %v894_v8 }
 0xab6   :  { %v896_v10 = vadd.f32 -0.015866, %v895_v9 }
 0xab8   :  { %v897_v2 = vmul.f32 %v896_v10, %v894_v8 }
 0xaba   :  { %v898_v11 = vadd.f32 0.04247222, %v897_v2  ;;  %v2567_v2 = vmov 1326507024  }
 0xabc   :  { %v899_v12 = vmul.f32 %v898_v11, %v894_v8 }
 0xabe   :  { %v900_v13 = vadd.f32 -0.074975304, %v899_v12 }
 0xac0   :  { %v901_v14 = vmul.f32 %v900_v13, %v894_v8 }
 0xac2   :  { %v902_v15 = vadd.f32 0.1064488, %v901_v14 }
 0xac4   :  { %v903_v16 = vmul.f32 %v902_v15, %v894_v8 }
 0xac6   :  { %v904_v17 = vadd.f32 -0.14207031, %v903_v16 }
 0xac8   :  { %v905_v19 = vmul.f32 %v904_v17, %v894_v8 }
 0xaca   :  { %v906_v21 = vadd.f32 0.19993454, %v905_v19 }
 0xacc   :  { %v907_v22 = vmul.f32 %v906_v21, %v894_v8 }
 0xace   :  { %v908_v23 = vadd.f32 -0.33333147, %v907_v22 }
 0xad0   :  { %v909_v24 = vmul.f32 %v908_v23, %v894_v8  ;;  %v2566_v8 = vmov 920167782  }
 0xad2   :  { %v910_v25 = vmul.f32 %v909_v24, %v893_v51 }
 0xad4   :  { %v911_v26 = vadd.f32 %v910_v25, %v893_v51 }
 0xad6   :  { %v913_v27 = vsub.f32 1.5707964, %v911_v26 }
 0xad8   :  { %v914_v28 = vsel %vm912_vm5, %v913_v27, %v911_v26 }
 0xad9   :  { %v916_v29 = vsub.f32 3.1415927, %v914_v28 }
 0xadb   :  { %v917_v30 = vsel %vm915_vm8, %v916_v29, %v914_v28 }
 0xadc   :  { %v921_v32 = vsel %vm920_vm10, %v919_v31, %v917_v30 }
 0xadd   :  { %v925_v33 = vsel %vm924_vm12, nan, %v921_v32 }
 0xade   :  { %v931_v35 = vsel %vm930_vm14, %v927_v34, %v925_v33 }
 0xadf   :  { %v932_v36 = vand.u32 2147483647, %v931_v35 }
 0xae1   :  { %v934_v38 = vor.u32 %v933_v37, %v932_v36 }
 0xae3   :  { %v983_v39 = vmul.f32 0.31830987, %v934_v38 }
 0xae5   :  { %996 = vperm.xlu0 %1983, %v983_v39  }
 0xae9   :  { %2025 = vset.pattern.permute.xlu0 %v2556_v20 }
 0xaf5   :  { %v3074_v40 = vpop.xlane.xlu0 %811 }
 0xaf6   :  { %v829_v41 = vmax.f32 %v3074_v40, 1e-12  ;;  %vm843_vm12 = vcmp.eq.f32.partialorder %v3074_v40, inf  ;;  %vm845_vm13 = vcmp.eq.f32.partialorder %v3074_v40, 0.0 }
 0xaf7   :  { %v827_v42 = vpop.xlane.xlu1 %826 }
 0xaf8   :  { %2036 = vrcp.f32 %v829_v41 }
 0xaf9   :  { %2038 = vrsqrt.f32 %v3074_v40 }
 0xafb   :  { %v1002_v47 = vpop.permute.xlu1 %1001 }
 0xb02   :  { %v2037_v43 = vpop.eup %2036 }
 0xb03   :  { %v833_v45 = vmul.f32 %v2037_v43, %v827_v42 }
 0xb05   :  { %v993_v46 = vmul.f32 %v3077_v44, %v833_v45 }
 0xb07   :  { %v1005_v48 = vadd.f32 %v1002_v47, %v993_v46 }
 0xb09   :  { %v3080_v50 = vmul.f32 3.1415927, %v1005_v48 }
 0xb0b   :  { %v1115_v52 = vand.u32 2139095040, %v3080_v50  ;;  %v1112_v55 = vand.u32 2147483647, %v3080_v50  ;;  %vm1114_vm10 = vcmp.lt.s32.totalorder %v3080_v50, 0 }
 0xb0d   :  { %v1116_v53 = vshrl.u32 %v1115_v52, 23  ;;  %v1119_v58 = vand.u32 8388607, %v1112_v55  ;;  %vm1113_vm11 = vcmp.le.f32.partialorder %v1112_v55, 0.7853982 }
 0xb0f   :  { %v1679_v20 = vadd.s32 4294967169, %v1116_v53  ;;  %v1120_v12 = vor.u32 8388608, %v1119_v58 }
 0xb11   :  { %v1122_v54 = vadd.s32 1, %v1679_v20  ;;  %v1160_v28 = vshll.u32 %v1120_v12, 8 }
 0xb13   :  { %vm1123_vm15 = vcmp.gt.s32.totalorder %v1122_v54, 0 }
 0xb14   :  { %v1124_v56 = vsel %vm1123_vm15, %v1122_v54, 0 }
 0xb15   :  { %v1126_v57 = vand.u32 31, %v1124_v56  ;;  %v1125_v60 = vshrl.u32 %v1124_v56, 5 }
 0xb17   :  { %v1127_v59 = vsub.s32 32, %v1126_v57  ;;  %v1129_v62 = vshll.u32 %v2562_v61, %v1126_v57  ;;  %v1132_v0 = vshll.u32 %v2563_v63, %v1126_v57  ;;  %v1135_v49 = vshll.u32 %v2564_v3, %v1126_v57 }
 0xb18   :  { %v1138_v51 = vshll.u32 %v2565_v5, %v1126_v57  ;;  %v1141_v10 = vshll.u32 %v2566_v8, %v1126_v57  ;;  %vm1144_vm2 = vcmp.lt.s32.totalorder %v1125_v60, 1  ;;  %vm1147_vm5 = vcmp.lt.s32.totalorder %v1125_v60, 4 }
 0xb19   :  { %v1130_v1 = vshrl.u32 %v2563_v63, %v1127_v59  ;;  %v1133_v4 = vshrl.u32 %v2564_v3, %v1127_v59  ;;  %v1136_v6 = vshrl.u32 %v2565_v5, %v1127_v59  ;;  %v1139_v9 = vshrl.u32 %v2566_v8, %v1127_v59 }
 0xb1a   :  { %v1142_v11 = vshrl.u32 %v2567_v2, %v1127_v59  ;;  %v1128_v23 = vshrl.u32 %v2562_v61, %v1127_v59  ;;  %vm1146_vm6 = vcmp.lt.s32.totalorder %v1125_v60, 3  ;;  %vm1145_vm7 = vcmp.lt.s32.totalorder %v1125_v60, 2 }
 0xb1b   :  { %v1131_v13 = vor.u32 %v1130_v1, %v1129_v62  ;;  %v1134_v14 = vor.u32 %v1133_v4, %v1132_v0  ;;  %v1137_v15 = vor.u32 %v1136_v6, %v1135_v49  ;;  %v1140_v16 = vor.u32 %v1139_v9, %v1138_v51 }
 0xb1c   :  { %v1143_v17 = vor.u32 %v1142_v11, %v1141_v10  ;;  %v2039_v11 = vpop.eup %2038 }
 0xb1d   :  { %v1149_v19 = vsel %vm1147_vm5, %v1137_v15, 2102212464  ;;  %v1152_v21 = vsel %vm1144_vm2, %v1131_v13, %v1134_v14  ;;  %v1156_v22 = vsel %vm1144_vm2, %v1134_v14, %v1137_v15  ;;  %v1153_v24 = vsel %vm1147_vm5, %v1140_v16, 920167782 }
 0xb1e   :  { %v1157_v25 = vsel %vm1147_vm5, %v1143_v17, 1326507024  ;;  %v1154_v26 = vsel %vm1146_vm6, %v1137_v15, %v1153_v24  ;;  %v1148_v29 = vsel %vm1144_vm2, %v1128_v23, %v1131_v13  ;;  %v1150_v30 = vsel %vm1146_vm6, %v1134_v14, %v1149_v19 }
 0xb1f   :  { %v1158_v27 = vsel %vm1146_vm6, %v1140_v16, %v1157_v25  ;;  %v1155_v31 = vsel %vm1145_vm7, %v1152_v21, %v1154_v26  ;;  %v1151_v37 = vsel %vm1145_vm7, %v1148_v29, %v1150_v30  ;;  %v842_v16 = vmul.f32 %v2039_v11, %v3074_v40 }
 0xb20   :  { %v1159_v32 = vsel %vm1145_vm7, %v1156_v22, %v1158_v27  ;;  %v3100_v35 = vmul.u32.u64.low %v1160_v28, %v1155_v31  ;;  %v3101_v36 = vmul.u32.u64.high %v1160_v28, %v1155_v31, %v3100_v35  ;;  %v1167_v39 = vmul.u32 %v1160_v28, %v1151_v37 }
 0xb21   :  { %v3097_v33 = vmul.u32.u64.low %v1160_v28, %v1159_v32  ;;  %v3098_v34 = vmul.u32.u64.high %v1160_v28, %v1159_v32, %v3097_v33  ;;  %v844_v22 = vsel %vm843_vm12, %v3074_v40, %v842_v16  ;;  %v846_v23 = vand.u32 2147483648, %v3074_v40  ;;  %v1226_v40 = vpop.permute.xlu1 %1225 }
 0xb22   :  { %v1170_v38 = vadd.s32 1, %v3101_v36  ;;  %vm1204_vm5 = vweird.f32 %v3080_v50 }
 0xb23   :  { %vm1169_vm8 = vc.u32 %v3098_v34, %v3100_v35  ;;  %v1168_v56 = vadd.s32 %v3100_v35, %v3098_v34  ;;  %v847_v55 = vsel %vm845_vm13, %v846_v23, %v844_v22 }
 0xb24   :  { %v1171_v41 = vsel %vm1169_vm8, %v1170_v38, %v3101_v36  ;;  %v849_v27 = vmul.f32 2.0, %v847_v55 }
 0xb25   :  { %v1172_v42 = vadd.s32 %v1171_v41, %v1167_v39 }
 0xb26   :  { %v851_v32 = vmul.f32 0.03125, %v849_v27 }
 0xb27   :  { %v1173_v43 = vadd.s32 536870912, %v1172_v42 }
 0xb29   :  { %v1174_v45 = vshrl.u32 %v1173_v43, 30 }
 0xb2b   :  { %v1175_v46 = vshll.u32 %v1174_v45, 30  ;;  %v1198_v9 = vsub.s32 4, %v1174_v45 }
 0xb2d   :  { %v1176_v47 = vsub.s32 %v1172_v42, %v1175_v46  ;;  %v1199_v13 = vsel %vm1114_vm10, %v1198_v9, %v1174_v45 }
 0xb2e   :  { %v1201_v17 = vsel %vm1113_vm11, 0, %v1199_v13 }
 0xb2f   :  { %v1178_v48 = vsub.s32 0, %v1176_v47  ;;  %v1205_v21 = vadd.s32 3, %v1201_v17 }
 0xb31   :  { %v1680_v52 = vmin.u32 %v1178_v48, %v1176_v47  ;;  %v1206_v24 = vand.u32 3, %v1205_v21 }
 0xb33   :  { %v1180_v53 = vclz %v1680_v52  ;;  %v3112_v15 = vpop.xlane.xlu0 %808  ;;  %vm1211_vm14 = vcmp.eq.s32.totalorder %v1206_v24, 2  ;;  %vm1208_vm15 = vcmp.eq.s32.totalorder %v1206_v24, 0  ;;  %vm1207_vm2 = vcmp.lt.s32.totalorder %v1206_v24, 2 }
 0xb34   :  { %v828_v19 = vmax.f32 %v3112_v15, 1e-12 }
 0xb35   :  { %v1681_v20 = vadd.s32 4294967294, %v1180_v53 }
 0xb37   :  { %vm1682_vm9 = vcmp.lt.s32.totalorder %v1681_v20, 0  ;;  %v824_v37 = vpop.xlane.xlu0 %823 }
 0xb38   :  { %v1183_v54 = vsel %vm1682_vm9, 0, %v1681_v20 }
 0xb39   :  { %v1184_v57 = vsub.s32 32, %v1183_v54  ;;  %v1188_v58 = vsub.s32 4294967266, %v1183_v54  ;;  %v1185_v59 = vshll.u32 %v1176_v47, %v1183_v54 }
 0xb3b   :  { %v1186_v60 = vshrl.u32 %v1168_v56, %v1184_v57  ;;  %v1189_v62 = vadd.s32 127, %v1188_v58 }
 0xb3d   :  { %v1187_v0 = vor.u32 %v1186_v60, %v1185_v59  ;;  %v1190_v1 = vshll.u32 %v1189_v62, 23 }
 0xb3f   :  { %v1191_v4 = vor.u32 4788187, %v1190_v1  ;;  %v1194_v6 = vcvt.s32.f32 %v1187_v0 }
 0xb41   :  { %v1192_v49 = vand.u32 2147483647, %v1191_v4 }
 0xb43   :  { %v1195_v51 = vmul.f32 %v1194_v6, %v1192_v49 }
 0xb45   :  { %v1196_v10 = vxor.u32 2147483648, %v1195_v51 }
 0xb47   :  { %v1197_v12 = vsel %vm1114_vm10, %v1196_v10, %v1195_v51 }
 0xb48   :  { %v1200_v14 = vsel %vm1113_vm11, %v3080_v50, %v1197_v12 }
 0xb49   :  { %2040 = vcosq.f32 %v1200_v14 }
 0xb4a   :  { %2042 = vsinq.f32 %v1200_v14 }
 0xb4b   :  { %2044 = vrcp.f32 %v828_v19 }
 0xb4c   :  { %2046 = vrsqrt.f32 %v3112_v15 }
 0xb53   :  { %v2041_v25 = vpop.eup %2040 }
 0xb54   :  { %v2043_v26 = vpop.eup %2042  ;;  %v1212_v28 = vxor.u32 2147483648, %v2041_v25 }
 0xb55   :  { %v1209_v29 = vxor.u32 2147483648, %v2043_v26  ;;  %v2045_v34 = vpop.eup %2044 }
 0xb56   :  { %v1213_v30 = vsel %vm1211_vm14, %v1212_v28, %v2043_v26  ;;  %v831_v39 = vmul.f32 %v2045_v34, %v824_v37 }
 0xb57   :  { %v1210_v31 = vsel %vm1208_vm15, %v2041_v25, %v1209_v29  ;;  %vm836_vm15 = vcmp.eq.f32.partialorder %v3112_v15, inf }
 0xb58   :  { %v1214_v33 = vsel %vm1207_vm2, %v1210_v31, %v1213_v30  ;;  %v992_v41 = vmul.f32 %v3077_v44, %v831_v39  ;;  %vm838_vm2 = vcmp.eq.f32.partialorder %v3112_v15, 0.0 }
 0xb59   :  { %v1215_v35 = vsel %vm1204_vm5, nan, %v1214_v33 }
 0xb5a   :  { %v1217_v36 = vmul.f32 %v1215_v35, %v851_v32 }
 0xb5c   :  { %v1229_v38 = vadd.f32 %v1226_v40, %v1217_v36 }
 0xb5e   :  { %1231 = vrot.lane.b32.xlu1 %v1229_v38, %s2553_s20 }
 0xb64   :  { %v997_v42 = vpop.permute.xlu0 %996 }
 0xb65   :  { %v1004_v43 = vadd.f32 %v997_v42, %v992_v41 }
 0xb67   :  { %v3123_v45 = vmul.f32 3.1415927, %v1004_v43 }
 0xb69   :  { %v1011_v46 = vand.u32 2139095040, %v3123_v45  ;;  %v1008_v52 = vand.u32 2147483647, %v3123_v45  ;;  %vm1010_vm13 = vcmp.lt.s32.totalorder %v3123_v45, 0 }
 0xb6b   :  { %v1012_v47 = vshrl.u32 %v1011_v46, 23  ;;  %v1015_v54 = vand.u32 8388607, %v1008_v52  ;;  %vm1009_vm14 = vcmp.le.f32.partialorder %v1008_v52, 0.7853982 }
 0xb6d   :  { %v1675_v50 = vadd.s32 4294967169, %v1012_v47  ;;  %v1016_v51 = vor.u32 8388608, %v1015_v54 }
 0xb6f   :  { %v1018_v48 = vadd.s32 1, %v1675_v50 }
 0xb71   :  { %vm1019_vm6 = vcmp.gt.s32.totalorder %v1018_v48, 0 }
 0xb72   :  { %v1020_v53 = vsel %vm1019_vm6, %v1018_v48, 0 }
 0xb73   :  { %v1022_v20 = vand.u32 31, %v1020_v53  ;;  %v1021_v57 = vshrl.u32 %v1020_v53, 5 }
 0xb75   :  { %v1023_v56 = vsub.s32 32, %v1022_v20  ;;  %v1025_v44 = vshll.u32 %v2562_v61, %v1022_v20  ;;  %v1028_v58 = vshll.u32 %v2563_v63, %v1022_v20  ;;  %v1031_v62 = vshll.u32 %v2564_v3, %v1022_v20 }
 0xb76   :  { %v1034_v1 = vshll.u32 %v2565_v5, %v1022_v20  ;;  %v1037_v49 = vshll.u32 %v2566_v8, %v1022_v20  ;;  %vm1040_vm7 = vcmp.lt.s32.totalorder %v1021_v57, 1  ;;  %vm1043_vm8 = vcmp.lt.s32.totalorder %v1021_v57, 4 }
 0xb77   :  { %v1026_v59 = vshrl.u32 %v2563_v63, %v1023_v56  ;;  %v1029_v60 = vshrl.u32 %v2564_v3, %v1023_v56  ;;  %v1032_v0 = vshrl.u32 %v2565_v5, %v1023_v56  ;;  %v1035_v4 = vshrl.u32 %v2566_v8, %v1023_v56 }
 0xb78   :  { %v1038_v6 = vshrl.u32 %v2567_v2, %v1023_v56  ;;  %v1024_v16 = vshrl.u32 %v2562_v61, %v1023_v56  ;;  %vm1042_vm9 = vcmp.lt.s32.totalorder %v1021_v57, 3  ;;  %vm1041_vm10 = vcmp.lt.s32.totalorder %v1021_v57, 2 }
 0xb79   :  { %v1027_v9 = vor.u32 %v1026_v59, %v1025_v44  ;;  %v1030_v10 = vor.u32 %v1029_v60, %v1028_v58  ;;  %v1033_v11 = vor.u32 %v1032_v0, %v1031_v62  ;;  %v1036_v12 = vor.u32 %v1035_v4, %v1034_v1  ;;  %v2047_v59 = vpop.eup %2046 }
 0xb7a   :  { %v1039_v63 = vor.u32 %v1038_v6, %v1037_v49  ;;  %v1056_v2 = vshll.u32 %v1016_v51, 8  ;;  %v835_v1 = vmul.f32 %v2047_v59, %v3112_v15  ;;  %v839_v51 = vand.u32 2147483648, %v3112_v15 }
 0xb7b   :  { %v1045_v13 = vsel %vm1043_vm8, %v1033_v11, 2102212464  ;;  %v1048_v3 = vsel %vm1040_vm7, %v1027_v9, %v1030_v10  ;;  %v1052_v14 = vsel %vm1040_vm7, %v1030_v10, %v1033_v11  ;;  %v1049_v5 = vsel %vm1043_vm8, %v1036_v12, 920167782 }
 0xb7c   :  { %v1053_v17 = vsel %vm1043_vm8, %v1039_v63, 1326507024  ;;  %v1050_v8 = vsel %vm1042_vm9, %v1033_v11, %v1049_v5  ;;  %v1044_v21 = vsel %vm1040_vm7, %v1024_v16, %v1027_v9  ;;  %v1046_v22 = vsel %vm1042_vm9, %v1030_v10, %v1045_v13 }
 0xb7d   :  { %v1054_v19 = vsel %vm1042_vm9, %v1036_v12, %v1053_v17  ;;  %v1051_v23 = vsel %vm1041_vm10, %v1048_v3, %v1050_v8  ;;  %v1047_v28 = vsel %vm1041_vm10, %v1044_v21, %v1046_v22  ;;  %v837_v6 = vsel %vm836_vm15, %v3112_v15, %v835_v1 }
 0xb7e   :  { %v1055_v55 = vsel %vm1041_vm10, %v1052_v14, %v1054_v19  ;;  %v3143_v26 = vmul.u32.u64.low %v1056_v2, %v1051_v23  ;;  %v3144_v27 = vmul.u32.u64.high %v1056_v2, %v1051_v23, %v3143_v26  ;;  %v1063_v29 = vmul.u32 %v1056_v2, %v1047_v28  ;;  %v1221_v19 = vpop.permute.xlu1 %1220 }
 0xb7f   :  { %v3140_v24 = vmul.u32.u64.low %v1056_v2, %v1055_v55  ;;  %v3141_v25 = vmul.u32.u64.high %v1056_v2, %v1055_v55, %v3140_v24  ;;  %v840_v9 = vsel %vm838_vm2, %v839_v51, %v837_v6  ;;  %vm1100_vm8 = vweird.f32 %v3123_v45 }
 0xb80   :  { %v1066_v61 = vadd.s32 1, %v3144_v27  ;;  %v848_v12 = vmul.f32 2.0, %v840_v9 }
 0xb81   :  { %vm1065_vm11 = vc.u32 %v3141_v25, %v3143_v26  ;;  %v1064_v41 = vadd.s32 %v3143_v26, %v3141_v25 }
 0xb82   :  { %v1067_v30 = vsel %vm1065_vm11, %v1066_v61, %v3144_v27  ;;  %v850_v16 = vmul.f32 0.03125, %v848_v12 }
 0xb83   :  { %v1068_v31 = vadd.s32 %v1067_v30, %v1063_v29 }
 0xb85   :  { %v1069_v32 = vadd.s32 536870912, %v1068_v31 }
 0xb87   :  { %v1070_v33 = vshrl.u32 %v1069_v32, 30 }
 0xb89   :  { %v1071_v34 = vshll.u32 %v1070_v33, 30  ;;  %v1094_v44 = vsub.s32 4, %v1070_v33 }
 0xb8b   :  { %v1072_v35 = vsub.s32 %v1068_v31, %v1071_v34  ;;  %v1095_v62 = vsel %vm1010_vm13, %v1094_v44, %v1070_v33 }
 0xb8c   :  { %v1097_v4 = vsel %vm1009_vm14, 0, %v1095_v62 }
 0xb8d   :  { %v1074_v36 = vsub.s32 0, %v1072_v35  ;;  %v1101_v49 = vadd.s32 3, %v1097_v4 }
 0xb8f   :  { %v1676_v40 = vmin.u32 %v1074_v36, %v1072_v35  ;;  %v1102_v52 = vand.u32 3, %v1101_v49 }
 0xb91   :  { %v1076_v37 = vclz %v1676_v40  ;;  %vm1107_vm5 = vcmp.eq.s32.totalorder %v1102_v52, 2  ;;  %vm1104_vm6 = vcmp.eq.s32.totalorder %v1102_v52, 0  ;;  %vm1103_vm7 = vcmp.lt.s32.totalorder %v1102_v52, 2  ;;  %v1236_v40 = vld [vmem:[#allocation20] sm:$0xff] }
 0xb93   :  { %v1677_v38 = vadd.s32 4294967294, %v1076_v37 }
 0xb95   :  { %vm1678_vm12 = vcmp.lt.s32.totalorder %v1677_v38, 0 }
 0xb96   :  { %v1079_v39 = vsel %vm1678_vm12, 0, %v1677_v38 }
 0xb97   :  { %v1080_v42 = vsub.s32 32, %v1079_v39  ;;  %v1084_v43 = vsub.s32 4294967266, %v1079_v39  ;;  %v1081_v46 = vshll.u32 %v1072_v35, %v1079_v39 }
 0xb99   :  { %v1082_v47 = vshrl.u32 %v1064_v41, %v1080_v42  ;;  %v1085_v50 = vadd.s32 127, %v1084_v43 }
 0xb9b   :  { %v1083_v48 = vor.u32 %v1082_v47, %v1081_v46  ;;  %v1086_v53 = vshll.u32 %v1085_v50, 23 }
 0xb9d   :  { %v1087_v20 = vor.u32 4788187, %v1086_v53  ;;  %v1090_v56 = vcvt.s32.f32 %v1083_v48 }
 0xb9f   :  { %v1088_v54 = vand.u32 2147483647, %v1087_v20 }
 0xba1   :  { %v1091_v57 = vmul.f32 %v1090_v56, %v1088_v54 }
 0xba3   :  { %v1092_v58 = vxor.u32 2147483648, %v1091_v57 }
 0xba5   :  { %v1093_v60 = vsel %vm1010_vm13, %v1092_v58, %v1091_v57 }
 0xba6   :  { %v1096_v0 = vsel %vm1009_vm14, %v3123_v45, %v1093_v60 }
 0xba7   :  { %2048 = vcosq.f32 %v1096_v0 }
 0xba8   :  { %2050 = vsinq.f32 %v1096_v0 }
 0xbb1   :  { %v2049_v10 = vpop.eup %2048 }
 0xbb2   :  { %v2051_v11 = vpop.eup %2050  ;;  %v1108_v63 = vxor.u32 2147483648, %v2049_v10 }
 0xbb3   :  { %v1105_v13 = vxor.u32 2147483648, %v2051_v11 }
 0xbb4   :  { %v1109_v3 = vsel %vm1107_vm5, %v1108_v63, %v2051_v11 }
 0xbb5   :  { %v1106_v14 = vsel %vm1104_vm6, %v2049_v10, %v1105_v13 }
 0xbb6   :  { %v1110_v5 = vsel %vm1103_vm7, %v1106_v14, %v1109_v3  ;;  %v1235_v3 = vld [vmem:[#allocation19] sm:$0xff] }
 0xbb7   :  { %v1111_v17 = vsel %vm1100_vm8, nan, %v1110_v5 }
 0xbb8   :  { %v1216_v8 = vmul.f32 %v1111_v17, %v850_v16 }
 0xbba   :  { %v1228_v15 = vadd.f32 %v1221_v19, %v1216_v8 }
 0xbd0   :  { %v1232_v2 = vpop.permute.xlu1 %1231 }
 0xbd1   :  { %v1234_v21 = vsel %vm375_vm3, %v1228_v15, %v1232_v2 }
 0xbd2   :  { %1268 = vrot.lane.b32.xlu1 %v1234_v21, %s2542_s18 }
 0xbd6   :  { %1238 = vrot.lane.b32.xlu1 %v1234_v21, %s2543_s2 }
 0xc44   :  { %v1269_v22 = vpop.permute.xlu1 %1268 }
 0xc45   :  { %v1271_v23 = vsel %vm297_vm0, 0.0, %v1269_v22 }
 0xc46   :  { %v1272_v55 = vsel %vm299_vm1, %v1271_v23, 0.0 }
 0xc47   :  { %1286 = vrot.lane.b32.xlu0 %v1272_v55, %s2548_s0  ;;  %1274 = vrot.lane.b32.xlu1 %v1272_v55, %s2545_s3 }
 0xc48   :  { %v1239_v45 = vpop.permute.xlu1 %1238 }
 0xc49   :  { %v1241_v24 = vsel %vm297_vm0, 0.0, %v1239_v45 }
 0xc4a   :  { %v1242_v25 = vsel %vm299_vm1, %v1241_v24, 0.0 }
 0xc4b   :  { %1276 = vrot.lane.b32.xlu1 %v1272_v55, %s2547_s13  ;;  %1244 = vrot.lane.b32.xlu0 %v1242_v25, %s2545_s3 }
 0xc4f   :  { %1278 = vrot.lane.b32.xlu1 %v1272_v55, %s2544_s8  ;;  %1247 = vrot.lane.b32.xlu0 %v1242_v25, %s2547_s13 }
 0xc53   :  { %1280 = vrot.lane.b32.xlu1 %v1272_v55, %s2549_s9  ;;  %1256 = vrot.lane.b32.xlu0 %v1242_v25, %s2546_s12 }
 0xc57   :  { %1282 = vrot.lane.b32.xlu1 %v1272_v55, %s2546_s12 }
 0xc5b   :  { %1284 = vrot.lane.b32.xlu1 %v1272_v55, %s2550_s23 }
 0xc5f   :  { %1288 = vrot.lane.b32.xlu1 %v1272_v55, %s2551_s15 }
 0xc63   :  { %1250 = vrot.lane.b32.xlu1 %v1242_v25, %s2544_s8 }
 0xcb9   :  { %v1275_v26 = vpop.permute.xlu1 %1274  ;;  %v1287_v33 = vpop.permute.xlu0 %1286 }
 0xcba   :  { %v1985_v27 = vpack.i.bf16 %v1275_v26, %v1272_v55 }
 0xcbc   :  { %1986 = vrot.lane.b32.xlu1 %v1985_v27, %s2553_s20 }
 0xcbd   :  { %v1277_v28 = vpop.permute.xlu1 %1276  ;;  %v1245_v37 = vpop.permute.xlu0 %1244 }
 0xcc0   :  { %1253 = vrot.lane.b32.xlu1 %v1242_v25, %s2549_s9 }
 0xcc1   :  { %v1279_v61 = vpop.permute.xlu1 %1278  ;;  %v1248_v39 = vpop.permute.xlu0 %1247 }
 0xcc2   :  { %v1990_v29 = vpack.i.bf16 %v1279_v61, %v1277_v28  ;;  %v1685_v28 = vld [vmem:[#allocation23] ss:$0 sm:$0xff] }
 0xcc4   :  { %1991 = vrot.lane.b32.xlu0 %v1990_v29, %s2553_s20 }
 0xcc5   :  { %v1281_v30 = vpop.permute.xlu1 %1280  ;;  %v1257_v50 = vpop.permute.xlu0 %1256 }
 0xcc8   :  { %1259 = vrot.lane.b32.xlu0 %v1242_v25, %s2550_s23 }
 0xcc9   :  { %v1283_v31 = vpop.permute.xlu1 %1282 }
 0xcca   :  { %v1995_v32 = vpack.i.bf16 %v1283_v31, %v1281_v30  ;;  %v1684_v30 = vld [vmem:[#allocation22] ss:$0 sm:$0xff] }
 0xccc   :  { %1996 = vrot.lane.b32.xlu1 %v1995_v32, %s2553_s20 }
 0xccd   :  { %v1285_v34 = vpop.permute.xlu1 %1284 }
 0xcce   :  { %v2000_v35 = vpack.i.bf16 %v1287_v33, %v1285_v34 }
 0xcd0   :  { %1262 = vrot.lane.b32.xlu1 %v1242_v25, %s2548_s0  ;;  %2001 = vrot.lane.b32.xlu0 %v2000_v35, %s2553_s20 }
 0xcd1   :  { %v1289_v36 = vpop.permute.xlu1 %1288 }
 0xcd4   :  { %1265 = vrot.lane.b32.xlu1 %v1242_v25, %s2551_s15  ;;  %1306 = vrot.lane.b32.xlu0 %v1289_v36, %s2553_s20 }
 0xcd5   :  { %v1251_v38 = vpop.permute.xlu1 %1250 }
 0xcd8   :  { %1328 = vperm.xlu1 %1984, %v1236_v40  }
 0xd2e   :  { %v1987_v41 = vpop.permute.xlu1 %1986 }
 0xd2f   :  { %v1989_v42 = vunpack.i.h.bf16 %v1987_v41  ;;  %v1988_v43 = vunpack.i.l.bf16 %v1987_v41 }
 0xd31   :  { %v1318_v46 = vsel %vm375_vm3, %v1245_v37, %v1989_v42  ;;  %v1317_v47 = vsel %vm375_vm3, %v1242_v25, %v1988_v43 }
 0xd32   :  { %v1862_v48 = vpack.c.bf16 %v1318_v46, %v1317_v47  ;;  %v1254_v44 = vpop.permute.xlu1 %1253 }
 0xd34   :  { %1863 = vmatpush3.bf16.msra.mxu1 %v1862_v48 }
 0xd35   :  { %1864 = vmatprep.subr.bf16.mxu1 %v2552_v7 }
 0xd36   :  { %v1992_v53 = vpop.permute.xlu0 %1991 }
 0xd37   :  { %v1994_v20 = vunpack.i.h.bf16 %v1992_v53  ;;  %v1993_v54 = vunpack.i.l.bf16 %v1992_v53 }
 0xd39   :  { %v1319_v56 = vsel %vm375_vm3, %v1248_v39, %v1993_v54  ;;  %v1320_v57 = vsel %vm375_vm3, %v1251_v38, %v1994_v20 }
 0xd3a   :  { %v1865_v58 = vpack.c.bf16 %v1320_v57, %v1319_v56  ;;  %v1260_v59 = vpop.permute.xlu0 %1259 }
 0xd3c   :  { %1866 = vmatpush3.bf16.msra.mxu1 %v1865_v58 }
 0xd3d   :  { %1867 = vmatprep.subr.bf16.mxu1 %v2552_v7 }
 0xd3e   :  { %v1997_v60 = vpop.permute.xlu1 %1996 }
 0xd3f   :  { %v1999_v62 = vunpack.i.h.bf16 %v1997_v60  ;;  %v1998_v0 = vunpack.i.l.bf16 %v1997_v60 }
 0xd41   :  { %v1322_v1 = vsel %vm375_vm3, %v1257_v50, %v1999_v62  ;;  %v1321_v4 = vsel %vm375_vm3, %v1254_v44, %v1998_v0 }
 0xd42   :  { %v1868_v49 = vpack.c.bf16 %v1322_v1, %v1321_v4  ;;  %v2002_v6 = vpop.permute.xlu0 %2001  ;;  %v1263_v51 = vpop.permute.xlu1 %1262 }
 0xd43   :  { %v2004_v9 = vunpack.i.h.bf16 %v2002_v6  ;;  %v2003_v52 = vunpack.i.l.bf16 %v2002_v6 }
 0xd44   :  { %1869 = vmatpush3.bf16.msra.mxu1 %v1868_v49 }
 0xd45   :  { %v1323_v10 = vsel %vm375_vm3, %v1260_v59, %v2003_v52  ;;  %v1324_v11 = vsel %vm375_vm3, %v1263_v51, %v2004_v9  ;;  %1870 = vmatprep.subr.bf16.mxu1 %v2552_v7 }
 0xd46   :  { %v1871_v12 = vpack.c.bf16 %v1324_v11, %v1323_v10  ;;  %v1307_v63 = vpop.permute.xlu0 %1306  ;;  %v1266_v13 = vpop.permute.xlu1 %1265 }
 0xd47   :  { %v1325_v14 = vsel %vm375_vm3, %v1266_v13, %v1307_v63 }
 0xd48   :  { %1872 = vmatpush3.bf16.msra.mxu1 %v1871_v12 }
 0xd49   :  { %1803 = vmatprep.subr.mxu1 %v2555_v18 }
 0xd4c   :  { %1804 = vmatpush3.msra.mxu1 %v1325_v14 }
 0xd4d   :  { %1806 = vmatmul.mubr.msk.f32.vlgmr.msra.gmra.mrb[2].mxu1 %vm390_vm4, %v1235_v3  ;;  %v1470_v3 = vld [vmem:[#allocation26] sm:$0xff] }
 0xd57   :  { %v1329_v16 = vpop.permute.xlu1 %1328 }
 0xe20   :  { %v1400_v5 = vpop.f32.mrb[2].mxu1 }
 0xe21   :  { %v1401_v17 = vadd.f32 %v1400_v5, %v1329_v16  ;;  %v1807_v8 = vpop.f32.mrb[3].mxu1 }
 0xe23   :  { %1434 = vrot.lane.b32.xlu0 %v1401_v17, %s2557_s1  ;;  %v1406_v19 = vsel %vm375_vm3, %v1401_v17, 0.0 }
 0xe42   :  { %1407 = vadd.xlane.f32.xlu0 %v1406_v19 }
 0xe95   :  { %v1435_v15 = vpop.permute.xlu0 %1434 }
 0xe96   :  { %v1437_v2 = vsel %vm375_vm3, %v1435_v15, 0.0 }
 0xe97   :  { %1438 = vadd.xlane.f32.xlu1 %v1437_v2 }
 0xecf   :  { %v1408_v21 = vpop.xlane.xlu0 %1407 }
 0xed0   :  { %v1409_v22 = vmul.f32 0.03125, %v1408_v21 }
 0xed2   :  { %v1410_v23 = vsub.f32 %v1401_v17, %v1409_v22 }
 0xed4   :  { %v1411_v55 = vmul.f32 %v1410_v23, %v1410_v23 }
 0xed6   :  { %v1412_v45 = vsel %vm375_vm3, %v1411_v55, 0.0 }
 0xed7   :  { %1413 = vadd.xlane.f32.xlu1 %v1412_v45 }
 0xf24   :  { %v1439_v24 = vpop.xlane.xlu1 %1438 }
 0xf25   :  { %v1440_v25 = vmul.f32 0.03125, %v1439_v24 }
 0xf27   :  { %v1441_v26 = vsub.f32 %v1401_v17, %v1440_v25 }
 0xf29   :  { %v1442_v27 = vmul.f32 %v1441_v26, %v1441_v26 }
 0xf2b   :  { %1444 = vrot.lane.b32.xlu0 %v1442_v27, %s2557_s1 }
 0xf2f   :  { %1458 = vrot.lane.b32.xlu0 %v1685_v28, %s2553_s20 }
 0xf64   :  { %v1414_v31 = vpop.xlane.xlu1 %1413 }
 0xf65   :  { %v1415_v32 = vmul.f32 0.03125, %v1414_v31 }
 0xf67   :  { %v1416_v33 = vadd.f32 1e-05, %v1415_v32 }
 0xf69   :  { %2052 = vrsqrt.f32 %v1416_v33 }
 0xf73   :  { %v2053_v40 = vpop.eup %2052 }
 0xf74   :  { %v1418_v37 = vmul.f32 %v2053_v40, %v1410_v23 }
 0xf76   :  { %v1425_v41 = vmul.f32 %v1684_v30, %v1418_v37 }
 0xf78   :  { %v1432_v47 = vadd.f32 %v1685_v28, %v1425_v41 }
 0xf9d   :  { %v1445_v61 = vpop.permute.xlu0 %1444 }
 0xf9e   :  { %v1447_v29 = vsel %vm375_vm3, %v1445_v61, 0.0 }
 0xf9f   :  { %1448 = vadd.xlane.f32.xlu1 %v1447_v29 }
 0xfa1   :  { %v1459_v43 = vpop.permute.xlu0 %1458 }
 0xfb0   :  { %1454 = vrot.lane.b32.xlu1 %v1684_v30, %s2553_s20 }
0x102c   :  { %v1449_v34 = vpop.xlane.xlu1 %1448 }
0x102d   :  { %v1450_v35 = vmul.f32 0.03125, %v1449_v34 }
0x102f   :  { %v1451_v36 = vadd.f32 1e-05, %v1450_v35 }
0x1030   :  { %v1455_v39 = vpop.permute.xlu1 %1454 }
0x1031   :  { %2054 = vrsqrt.f32 %v1451_v36 }
0x103b   :  { %v2055_v38 = vpop.eup %2054 }
0x103c   :  { %v1453_v42 = vmul.f32 %v2055_v38, %v1441_v26 }
0x103e   :  { %v1457_v46 = vmul.f32 %v1455_v39, %v1453_v42 }
0x1040   :  { %v1461_v50 = vadd.f32 %v1459_v43, %v1457_v46  ;;  %v1469_v43 = vld [vmem:[#allocation25] sm:$0xff] }
0x1042   :  { %v1462_v48 = vsel %vm375_vm3, %v1432_v47, %v1461_v50 }
0x1043   :  { %v1464_v53 = vmin.f32 %v1462_v48, 0.0  ;;  %vm1463_vm9 = vcmp.gt.f32.partialorder %v1462_v48, 0.0 }
0x1045   :  { %v1465_v20 = vmul.f32 1.442695, %v1464_v53 }
0x1047   :  { %2056 = vpow2.f32 %v1465_v20  ;;  %v2058_v20 = vld [vmem:[#allocation2] sm:$0xff] }
0x1051   :  { %v2057_v54 = vpop.eup %2056 }
0x1052   :  { %v1686_v56 = vadd.f32 -1.0, %v2057_v54 }
0x1054   :  { %v1468_v57 = vsel %vm1463_vm9, %v1462_v48, %v1686_v56 }
0x1055   :  { %1472 = vrot.lane.b32.xlu1 %v1468_v57, %s2543_s2  ;;  %1502 = vrot.lane.b32.xlu0 %v1468_v57, %s2542_s18 }
0x10c7   :  { %v1503_v44 = vpop.permute.xlu0 %1502  ;;  %v1473_v60 = vpop.permute.xlu1 %1472 }
0x10c8   :  { %v1505_v58 = vsel %vm297_vm0, 0.0, %v1503_v44  ;;  %v1475_v62 = vsel %vm297_vm0, 0.0, %v1473_v60  ;;  %vm1640_vm0 = vcmask 523264  }
0x10c9   :  { %v1506_v59 = vsel %vm299_vm1, %v1505_v58, 0.0  ;;  %v1476_v0 = vsel %vm299_vm1, %v1475_v62, 0.0 }
0x10ca   :  { %1510 = vrot.lane.b32.xlu1 %v1506_v59, %s2547_s13  ;;  %1508 = vrot.lane.b32.xlu0 %v1506_v59, %s2545_s3 }
0x10ce   :  { %1514 = vrot.lane.b32.xlu1 %v1506_v59, %s2549_s9  ;;  %1512 = vrot.lane.b32.xlu0 %v1506_v59, %s2544_s8 }
0x10d2   :  { %1518 = vrot.lane.b32.xlu1 %v1506_v59, %s2550_s23  ;;  %1516 = vrot.lane.b32.xlu0 %v1506_v59, %s2546_s12 }
0x10d6   :  { %1522 = vrot.lane.b32.xlu1 %v1506_v59, %s2551_s15  ;;  %1520 = vrot.lane.b32.xlu0 %v1506_v59, %s2548_s0 }
0x10da   :  { %1484 = vrot.lane.b32.xlu1 %v1476_v0, %s2544_s8  ;;  %1478 = vrot.lane.b32.xlu0 %v1476_v0, %s2545_s3 }
0x10de   :  { %1481 = vrot.lane.b32.xlu0 %v1476_v0, %s2547_s13 }
0x10e2   :  { %1490 = vrot.lane.b32.xlu0 %v1476_v0, %s2546_s12 }
0x113c   :  { %v1511_v1 = vpop.permute.xlu1 %1510  ;;  %v1509_v4 = vpop.permute.xlu0 %1508 }
0x113d   :  { %v2005_v49 = vpack.i.bf16 %v1509_v4, %v1506_v59 }
0x113f   :  { %2006 = vrot.lane.b32.xlu1 %v2005_v49, %s2553_s20 }
0x1140   :  { %v1513_v6 = vpop.permute.xlu0 %1512  ;;  %v1515_v9 = vpop.permute.xlu1 %1514 }
0x1141   :  { %v2010_v51 = vpack.i.bf16 %v1513_v6, %v1511_v1 }
0x1143   :  { %1487 = vrot.lane.b32.xlu1 %v1476_v0, %s2549_s9  ;;  %2011 = vrot.lane.b32.xlu0 %v2010_v51, %s2553_s20 }
0x1144   :  { %v1517_v52 = vpop.permute.xlu0 %1516  ;;  %v1519_v11 = vpop.permute.xlu1 %1518 }
0x1145   :  { %v2015_v10 = vpack.i.bf16 %v1517_v52, %v1515_v9 }
0x1147   :  { %1493 = vrot.lane.b32.xlu0 %v1476_v0, %s2550_s23  ;;  %2016 = vrot.lane.b32.xlu1 %v2015_v10, %s2553_s20 }
0x1148   :  { %v1521_v12 = vpop.permute.xlu0 %1520  ;;  %v1523_v13 = vpop.permute.xlu1 %1522 }
0x1149   :  { %v2020_v63 = vpack.i.bf16 %v1521_v12, %v1519_v11 }
0x114b   :  { %1496 = vrot.lane.b32.xlu1 %v1476_v0, %s2548_s0  ;;  %2021 = vrot.lane.b32.xlu0 %v2020_v63, %s2553_s20 }
0x114c   :  { %v1479_v14 = vpop.permute.xlu0 %1478  ;;  %v1485_v5 = vpop.permute.xlu1 %1484 }
0x114f   :  { %1499 = vrot.lane.b32.xlu1 %v1476_v0, %s2551_s15  ;;  %1540 = vrot.lane.b32.xlu0 %v1523_v13, %s2553_s20 }
0x1150   :  { %v1482_v16 = vpop.permute.xlu0 %1481 }
0x1153   :  { %1562 = vperm.xlu1 %1984, %v1470_v3  }
0x1154   :  { %v1491_v17 = vpop.permute.xlu0 %1490 }
0x11b1   :  { %v2007_v8 = vpop.permute.xlu1 %2006 }
0x11b2   :  { %v2009_v19 = vunpack.i.h.bf16 %v2007_v8  ;;  %v2008_v15 = vunpack.i.l.bf16 %v2007_v8 }
0x11b4   :  { %v1551_v2 = vsel %vm375_vm3, %v1476_v0, %v2008_v15  ;;  %v1552_v21 = vsel %vm375_vm3, %v1479_v14, %v2009_v19 }
0x11b5   :  { %v1874_v22 = vpack.c.bf16 %v1552_v21, %v1551_v2  ;;  %v1488_v23 = vpop.permute.xlu1 %1487  ;;  %v2012_v55 = vpop.permute.xlu0 %2011 }
0x11b6   :  { %v2014_v45 = vunpack.i.h.bf16 %v2012_v55  ;;  %v2013_v24 = vunpack.i.l.bf16 %v2012_v55 }
0x11b7   :  { %1875 = vmatpush3.bf16.msra.mxu0 %v1874_v22 }
0x11b8   :  { %v1554_v25 = vsel %vm375_vm3, %v1485_v5, %v2014_v45  ;;  %v1553_v26 = vsel %vm375_vm3, %v1482_v16, %v2013_v24  ;;  %1876 = vmatprep.subr.bf16.mxu0 %v2552_v7 }
0x11b9   :  { %v1877_v27 = vpack.c.bf16 %v1554_v25, %v1553_v26  ;;  %v2017_v28 = vpop.permute.xlu1 %2016  ;;  %v1494_v61 = vpop.permute.xlu0 %1493 }
0x11ba   :  { %v2019_v29 = vunpack.i.h.bf16 %v2017_v28  ;;  %v2018_v30 = vunpack.i.l.bf16 %v2017_v28 }
0x11bb   :  { %1878 = vmatpush3.bf16.msra.mxu0 %v1877_v27 }
0x11bc   :  { %v1555_v31 = vsel %vm375_vm3, %v1488_v23, %v2018_v30  ;;  %v1556_v32 = vsel %vm375_vm3, %v1491_v17, %v2019_v29  ;;  %1879 = vmatprep.subr.bf16.mxu0 %v2552_v7 }
0x11bd   :  { %v1880_v33 = vpack.c.bf16 %v1556_v32, %v1555_v31  ;;  %v1497_v34 = vpop.permute.xlu1 %1496  ;;  %v2022_v35 = vpop.permute.xlu0 %2021 }
0x11be   :  { %v2024_v36 = vunpack.i.h.bf16 %v2022_v35  ;;  %v2023_v40 = vunpack.i.l.bf16 %v2022_v35 }
0x11bf   :  { %1881 = vmatpush3.bf16.msra.mxu0 %v1880_v33 }
0x11c0   :  { %v1558_v37 = vsel %vm375_vm3, %v1497_v34, %v2024_v36  ;;  %v1557_v38 = vsel %vm375_vm3, %v1494_v61, %v2023_v40  ;;  %1882 = vmatprep.subr.bf16.mxu0 %v2552_v7 }
0x11c1   :  { %v1883_v39 = vpack.c.bf16 %v1558_v37, %v1557_v38  ;;  %v1500_v41 = vpop.permute.xlu1 %1499  ;;  %v1541_v42 = vpop.permute.xlu0 %1540 }
0x11c2   :  { %v1559_v46 = vsel %vm375_vm3, %v1500_v41, %v1541_v42 }
0x11c3   :  { %1884 = vmatpush3.bf16.msra.mxu0 %v1883_v39 }
0x11c4   :  { %1824 = vmatprep.subr.mxu0 %v2555_v18 }
0x11c7   :  { %1825 = vmatpush3.msra.mxu0 %v1559_v46 }
0x11c8   :  { %1827 = vmatmul.mubr.msk.f32.vlgmr.msra.gmra.mrb[4].mxu0 %vm390_vm4, %v1469_v43 }
0x11d2   :  { %v1563_v47 = vpop.permute.xlu1 %1562 }
0x129b   :  { %v1634_v50 = vpop.f32.mrb[4].mxu0 }
0x129c   :  { %v1635_v48 = vadd.f32 %v1634_v50, %v1563_v47  ;;  %v1828_v53 = vpop.f32.mrb[5].mxu0 }
0x129e   :  { %v1638_v7 = vsub.f32 %v1635_v48, %v2058_v20 }
0x12a0   :  { %v1639_v54 = vmul.f32 %v1638_v7, %v1638_v7 }
0x12a2   :  { %1641 = vst.msk [vmem:[#allocation32] sm:$0xff] %vm1640_vm0, %v1639_v54 }
0x12a3   :  { %2488 = shalt.err (!%p2485_p2)
}
0x12a4   :  { %s2489_s28 = scalar_lea.hbm %s3284_s19, 128 }
0x12a5   :  { %p2490_p3 = scmp.ne.s32.totalorder %s3284_s19, %s2489_s28  ;;  %p2493_p4 = scmp.lt.u32.totalorder %s2489_s28, %s3284_s19 }
0x12a7   :  { %p2495_p5 = pnand %p2493_p4, %p2490_p3 }
0x12a9   :  { %2498 = shalt.err (!%p2495_p5)
}
0x12aa   :  { %1651 = dma.vmem_to_hbm [thread:$0]  %s1649_s14, 128, %s3284_s19, [#allocation4]  }
0x12ab   :  { %2519 = dma.done.wait [#allocation4], 128  }
0x12ac   :  { %2520 = vsyncadd [#allocation4], 4294967168 }
0x12ad   :  { %1655 = vsyncpa [#allocation3], 1 }
0x12ae   :  { %1656 = vsyncpa [#allocation6], 1 }
0x12af   :  { %1657 = vsyncpa [#allocation9], 1 }
0x12b0   :  { %1658 = vsyncpa [#allocation12], 1 }
0x12b1   :  { %1659 = vsyncpa [#allocation15], 1 }
0x12b2   :  { %1660 = vsyncpa [#allocation18], 1 }
0x12b3   :  { %1661 = vsyncpa [#allocation21], 1 }
0x12b4   :  { %1662 = vsyncpa [#allocation24], 1 }
0x12b5   :  { %1663 = vsyncpa [#allocation27], 1 }
0x12b6   :  { %1664 = vsyncpa [#allocation30], 1 }
0x12b7   :  { %1665 = vsyncpa [#allocation4], 1 }

</bundles_post_ra>
